<compile_context>
chip_gen: v5e
topology: v5e:2x2
jax: 0.10.0
libtpu: 0.0.40
codegen_flags: <defaults>
</compile_context>

<pallas_src>
import jax
import jax.numpy as jnp
from jax import lax
from jax.experimental import pallas as pl
from jax.experimental.pallas import tpu as pltpu

# ----------------------------- configuration --------------------------------
B = 2            # batch
C = 3            # image channels
IMG = 16         # image spatial size (stand-in for CLIP's 224)
P = 8            # patch size (stand-in for 14)
GRID = IMG // P
NP = GRID * GRID              # number of patches = 4
SEQ = NP + 1                  # +1 CLS token = 5
TOK = B * SEQ                 # batch folded into token axis = 10
HIDDEN = 32      # hidden size (stand-in for 1024)
HEADS = 4
HEAD_DIM = HIDDEN // HEADS    # 8
MLP = 4 * HIDDEN              # 128
LAYERS = 2       # encoder layers (stand-in for 24)
PROJ = 16        # visual projection dim (stand-in for 768)
EPS = 1e-5
CPP = C * P * P               # flattened patch length = 192
NVEC = 8                      # packed small-vector rows per layer

COMPUTE = jnp.bfloat16        # MXU operand dtype (f32 accumulation)

# CLIPProcessor normalization constants
CLIP_MEAN = (0.48145466, 0.4578275, 0.40821073)
CLIP_STD = (0.26862954, 0.26130258, 0.27577711)


# ------------------------------ in-kernel helpers -----------------------------
def _ln(x, g, b):
    """Row-wise LayerNorm in f32. x: [R, D], g/b: [1, D]."""
    m = jnp.mean(x, axis=-1, keepdims=True)
    v = jnp.mean(jnp.square(x - m), axis=-1, keepdims=True)
    return (x - m) * lax.rsqrt(v + EPS) * g + b


# --------------------- the single fused forward kernel ------------------------
def _fused_kernel(patches_ref, pe_w_ref, tok_b_ref, lnc_ref, proj_w_ref,
                  wqkv_ref, wo_ref, wfc1_ref, wfc2_ref, vec_ref,
                  out_ref, h_ref):
    l = pl.program_id(0)
    lnc = lnc_ref[...]                                              # [4, HIDDEN] f32

    # ---- layer 0 only: patch embed + CLS/pos bias + pre-LN into resident activation ----
    @pl.when(l == 0)
    def _():
        p = patches_ref[...].astype(COMPUTE)                        # [TOK, CPP]
        x0 = jnp.dot(p, pe_w_ref[...], preferred_element_type=jnp.float32)
        x0 = x0 + tok_b_ref[...]                                    # pos + cls + folded conv bias
        h_ref[...] = _ln(x0, lnc[0:1, :], lnc[1:2, :])              # pre-LN fused

    # ---- encoder layer l (weights for this layer selected by the grid index_map) ----
    x = h_ref[...]                                                  # [TOK, HIDDEN] f32
    vec = vec_ref[0]                                                # [NVEC, MLP] f32
    ln1_g, ln1_b = vec[0:1, :HIDDEN], vec[1:2, :HIDDEN]
    bqkv = vec[2:3, :3 * HIDDEN]
    o_b = vec[3:4, :HIDDEN]
    ln2_g, ln2_b = vec[4:5, :HIDDEN], vec[5:6, :HIDDEN]
    fc1_b = vec[6:7, :]
    fc2_b = vec[7:8, :HIDDEN]

    # fused QKV projection: one [TOK,HIDDEN]@[HIDDEN,3*HIDDEN] MXU pass
    xn = _ln(x, ln1_g, ln1_b).astype(COMPUTE)
    qkv = jnp.dot(xn, wqkv_ref[0], preferred_element_type=jnp.float32) + bqkv
    qkv = qkv.astype(COMPUTE)                                       # [TOK, 3*HIDDEN]

    # per-(batch, head) scaled-dot-product attention on static slices of qkv
    ctx_rows = []
    for b in range(B):
        r0 = b * SEQ
        head_ctx = []
        for hd in range(HEADS):
            c0 = hd * HEAD_DIM
            q = qkv[r0:r0 + SEQ, c0:c0 + HEAD_DIM]                  # scale folded into Wq/bq
            k = qkv[r0:r0 + SEQ, HIDDEN + c0:HIDDEN + c0 + HEAD_DIM]
            v = qkv[r0:r0 + SEQ, 2 * HIDDEN + c0:2 * HIDDEN + c0 + HEAD_DIM]
            s = lax.dot_general(q, k, (((1,), (1,)), ((), ())),
                                preferred_element_type=jnp.float32)  # [SEQ, SEQ]
            s = s - jnp.max(s, axis=-1, keepdims=True)
            pr = jnp.exp(s)
            pr = pr * pl.reciprocal(jnp.sum(pr, axis=-1, keepdims=True), approx=True)
            head_ctx.append(jnp.dot(pr.astype(COMPUTE), v,
                                    preferred_element_type=jnp.float32))  # [SEQ, Dh]
        ctx_rows.append(jnp.concatenate(head_ctx, axis=-1))         # [SEQ, HIDDEN]
    ctx = jnp.concatenate(ctx_rows, axis=0).astype(COMPUTE)         # [TOK, HIDDEN]

    # single dense o_proj + residual
    acc = x + jnp.dot(ctx, wo_ref[0], preferred_element_type=jnp.float32) + o_b

    # MLP block (LN2 + fc1 + QuickGELU + fc2 + residual), fused
    xn2 = _ln(acc, ln2_g, ln2_b).astype(COMPUTE)
    h1 = jnp.dot(xn2, wfc1_ref[0], preferred_element_type=jnp.float32) + fc1_b
    h1 = h1 * jax.nn.sigmoid(1.702 * h1)                            # QuickGELU (f32)
    out = acc + jnp.dot(h1.astype(COMPUTE), wfc2_ref[0],
                        preferred_element_type=jnp.float32) + fc2_b
    h_ref[...] = out

    # ---- last layer only: post-LN on CLS rows + visual projection ----
    @pl.when(l == LAYERS - 1)
    def _():
        pooled = jnp.concatenate([out[b * SEQ:b * SEQ + 1, :] for b in range(B)], axis=0)
        pn = _ln(pooled, lnc[2:3, :], lnc[3:4, :]).astype(COMPUTE)   # [B, HIDDEN]
        out_ref[...] = jnp.dot(pn, proj_w_ref[...],
                               preferred_element_type=jnp.float32).astype(out_ref.dtype)


def clip_forward(patches, pp):
    const2 = lambda shape: pl.BlockSpec(shape, lambda l: (0, 0))
    layer3 = lambda shape: pl.BlockSpec(shape, lambda l: (l, 0, 0))
    return pl.pallas_call(
        _fused_kernel,
        out_shape=jax.ShapeDtypeStruct((B, PROJ), jnp.float32),
        grid=(LAYERS,),
        in_specs=[
            const2((TOK, CPP)),                      # patches (zero CLS rows included)
            const2((CPP, HIDDEN)),                   # folded patch-embed weight (bf16)
            const2((TOK, HIDDEN)),                   # pos + cls + conv-bias per token
            const2((4, HIDDEN)),                     # pre/post LN gamma/beta
            const2((HIDDEN, PROJ)),                  # visual projection (bf16)
            layer3((1, HIDDEN, 3 * HIDDEN)),         # fused QKV weights (scale folded)
            layer3((1, HIDDEN, HIDDEN)),             # o_proj weights
            layer3((1, HIDDEN, MLP)),                # fc1 weights
            layer3((1, MLP, HIDDEN)),                # fc2 weights
            layer3((1, NVEC, MLP)),                  # packed per-layer biases / LN params
        ],
        out_specs=pl.BlockSpec((B, PROJ), lambda l: (0, 0)),
        scratch_shapes=[pltpu.VMEM((TOK, HIDDEN), jnp.float32)],     # resident activation
        compiler_params=pltpu.CompilerParams(
            dimension_semantics=("arbitrary",),
            vmem_limit_bytes=32 * 1024 * 1024,
        ),
    )(patches, pp["eff_patch_w"], pp["token_bias"], pp["lnc"], pp["proj_w"],
      pp["w_qkv"], pp["w_o"], pp["w_fc1"], pp["w_fc2"], pp["vecs"])


# ------------------------------ parameter init -------------------------------
def init_params(key):
    """PyTorch-layout f32 parameters (like a CLIP vision-tower state dict)."""
    ks = iter(jax.random.split(key, 64))
    n = lambda shape, s=0.02: (s * jax.random.normal(next(ks), shape)).astype(jnp.float32)
    ones = lambda shape: jnp.ones(shape, jnp.float32)
    zeros = lambda shape: jnp.zeros(shape, jnp.float32)

    params = dict(
        patch_w=n((CPP, HIDDEN)),                  # Conv2d weight flattened to (C*P*P, HIDDEN)
        class_emb=n((HIDDEN,)),
        pos_emb=n((SEQ, HIDDEN)),
        pre_ln_g=ones((HIDDEN,)), pre_ln_b=zeros((HIDDEN,)),
        post_ln_g=ones((HIDDEN,)), post_ln_b=zeros((HIDDEN,)),
        proj_w=n((HIDDEN, PROJ)),                  # Linear(HIDDEN, PROJ, bias=False), (in,out)
        layers=[],
    )
    for _ in range(LAYERS):
        params["layers"].append(dict(
            ln1_g=ones((HIDDEN,)), ln1_b=zeros((HIDDEN,)),
            q_w=n((HIDDEN, HIDDEN)), q_b=n((HIDDEN,)),
            k_w=n((HIDDEN, HIDDEN)), k_b=n((HIDDEN,)),
            v_w=n((HIDDEN, HIDDEN)), v_b=n((HIDDEN,)),
            o_w=n((HIDDEN, HIDDEN)), o_b=n((HIDDEN,)),
            ln2_g=ones((HIDDEN,)), ln2_b=zeros((HIDDEN,)),
            fc1_w=n((HIDDEN, MLP)), fc1_b=n((MLP,)),
            fc2_w=n((MLP, HIDDEN)), fc2_b=n((HIDDEN,)),
        ))
    return params


def prepare_params(params):
    """One-time restructuring for the fused kernel:
    - fold CLIPProcessor rescale(1/255) + mean/std normalization exactly into the
      patch-embed weights + a per-token bias,
    - fold the attention scale into Wq/bq,
    - fuse Q/K/V weights into one [HIDDEN, 3*HIDDEN] slab per layer,
    - pack all per-layer small vectors into one [NVEC, MLP] slab per layer,
    - stack layers on a leading axis (grid-indexed) and cast MXU weights to bf16."""
    mean = jnp.array(CLIP_MEAN, jnp.float32)
    std = jnp.array(CLIP_STD, jnp.float32)
    ch = jnp.repeat(jnp.arange(C), P * P)                    # channel of each flattened elem
    scale = (1.0 / (255.0 * std))[ch]                        # [CPP]
    shift = (-mean / std)[ch]                                # [CPP]
    eff_patch_w = params["patch_w"] * scale[:, None]         # [CPP, HIDDEN]
    conv_bias = shift @ params["patch_w"]                    # [HIDDEN]
    token_bias = params["pos_emb"] + jnp.concatenate(
        [params["class_emb"][None, :], jnp.tile(conv_bias[None, :], (NP, 1))], axis=0)
    token_bias_full = jnp.tile(token_bias, (B, 1))           # [TOK, HIDDEN]

    lnc = jnp.stack([params["pre_ln_g"], params["pre_ln_b"],
                     params["post_ln_g"], params["post_ln_b"]], axis=0)   # [4, HIDDEN]

    qscale = HEAD_DIM ** -0.5
    row = lambda v: jnp.pad(v, (0, MLP - v.shape[0]))        # pad a vector to MLP lanes
    w_qkv, w_o, w_fc1, w_fc2, vecs = [], [], [], [], []
    for lp in params["layers"]:
        w_qkv.append(jnp.concatenate([lp["q_w"] * qscale, lp["k_w"], lp["v_w"]], axis=1))
        w_o.append(lp["o_w"])
        w_fc1.append(lp["fc1_w"])
        w_fc2.append(lp["fc2_w"])
        bqkv = jnp.concatenate([lp["q_b"] * qscale, lp["k_b"], lp["v_b"]])
        vecs.append(jnp.stack([row(lp["ln1_g"]), row(lp["ln1_b"]), row(bqkv),
                               row(lp["o_b"]), row(lp["ln2_g"]), row(lp["ln2_b"]),
                               row(lp["fc1_b"]), row(lp["fc2_b"])], axis=0))

    return dict(
        eff_patch_w=eff_patch_w.astype(COMPUTE),
        token_bias=token_bias_full,
        lnc=lnc,
        proj_w=params["proj_w"].astype(COMPUTE),
        w_qkv=jnp.stack(w_qkv).astype(COMPUTE),               # [LAYERS, HIDDEN, 3*HIDDEN]
        w_o=jnp.stack(w_o).astype(COMPUTE),                   # [LAYERS, HIDDEN, HIDDEN]
        w_fc1=jnp.stack(w_fc1).astype(COMPUTE),               # [LAYERS, HIDDEN, MLP]
        w_fc2=jnp.stack(w_fc2).astype(COMPUTE),               # [LAYERS, MLP, HIDDEN]
        vecs=jnp.stack(vecs),                                 # [LAYERS, NVEC, MLP] f32
    )


# ------------------------------ forward pass ---------------------------------
def clip_image_features(image_nchw, prepared):
    """Mirror of FeatureExtractor.forward: preprocess -> CLIP vision tower ->
    visual projection.  Returns [B, PROJ] image features."""
    # TODO(synk): CLIPProcessor's PIL resize/center-crop has no Pallas equivalent;
    # input is assumed already IMG x IMG.  Rescale + normalize are folded exactly
    # into eff_patch_w / token_bias (see prepare_params), so raw pixels go in.
    Bn = image_nchw.shape[0]
    x = image_nchw.astype(jnp.float32)
    # conv(stride=kernel=P, bias=False) as a patch-flatten (C, Ph, Pw order) + matmul
    patches = x.reshape(Bn, C, GRID, P, GRID, P)
    patches = patches.transpose(0, 2, 4, 1, 3, 5).reshape(Bn, NP, CPP)
    # prepend a zero row per image so one matmul covers the CLS slot too; fold batch
    patches = jnp.concatenate([jnp.zeros((Bn, 1, CPP), jnp.float32), patches], axis=1)
    patches = patches.reshape(Bn * SEQ, CPP)
    return clip_forward(patches, prepared)                    # [B, PROJ]


# ------------------------- pure-JAX f32 reference ------------------------------
def _ref_ln(x, g, b):
    m = jnp.mean(x, -1, keepdims=True)
    v = jnp.mean(jnp.square(x - m), -1, keepdims=True)
    return (x - m) / jnp.sqrt(v + EPS) * g + b


def reference_features(image_nchw, params):
    mean = jnp.array(CLIP_MEAN, jnp.float32).reshape(1, C, 1, 1)
    std = jnp.array(CLIP_STD, jnp.float32).reshape(1, C, 1, 1)
    x = (image_nchw.astype(jnp.float32) / 255.0 - mean) / std
    p = x.reshape(B, C, GRID, P, GRID, P).transpose(0, 2, 4, 1, 3, 5).reshape(B, NP, CPP)
    emb = p @ params["patch_w"]
    cls = jnp.broadcast_to(params["class_emb"], (B, 1, HIDDEN))
    h = jnp.concatenate([cls, emb], axis=1) + params["pos_emb"][None]
    h = _ref_ln(h, params["pre_ln_g"], params["pre_ln_b"])
    sc = HEAD_DIM ** -0.5
    for lp in params["layers"]:
        xn = _ref_ln(h, lp["ln1_g"], lp["ln1_b"])
        q = ((xn @ lp["q_w"] + lp["q_b"]) * sc).reshape(B, SEQ, HEADS, HEAD_DIM).transpose(0, 2, 1, 3)
        k = (xn @ lp["k_w"] + lp["k_b"]).reshape(B, SEQ, HEADS, HEAD_DIM).transpose(0, 2, 1, 3)
        v = (xn @ lp["v_w"] + lp["v_b"]).reshape(B, SEQ, HEADS, HEAD_DIM).transpose(0, 2, 1, 3)
        att = jax.nn.softmax(q @ jnp.swapaxes(k, -1, -2), axis=-1)
        ctx = (att @ v).transpose(0, 2, 1, 3).reshape(B, SEQ, HIDDEN)
        h = h + ctx @ lp["o_w"] + lp["o_b"]
        xn2 = _ref_ln(h, lp["ln2_g"], lp["ln2_b"])
        m = xn2 @ lp["fc1_w"] + lp["fc1_b"]
        m = m * jax.nn.sigmoid(1.702 * m)
        h = h + m @ lp["fc2_w"] + lp["fc2_b"]
    pooled = _ref_ln(h[:, 0], params["post_ln_g"], params["post_ln_b"])
    return pooled @ params["proj_w"]


# ---------------------------------- main --------------------------------------
if __name__ == "__main__":
    key = jax.random.PRNGKey(0)
    k_img, k_par = jax.random.split(key)
    # synthetic uint8-range image, NCHW
    image = jax.random.uniform(k_img, (B, C, IMG, IMG), jnp.float32,
                               minval=0.0, maxval=255.0)
    params = init_params(k_par)
    prepared = prepare_params(params)

    feats = jax.jit(clip_image_features)(image, prepared)
    feats = jax.block_until_ready(feats)
    assert feats.shape == (B, PROJ), feats.shape
    assert bool(jnp.all(jnp.isfinite(feats)))

    # loose tolerance: kernel uses bf16 MXU operands + approx-reciprocal softmax
    ref = reference_features(image, params)
    err = float(jnp.max(jnp.abs(feats - ref)))
    scale = float(jnp.max(jnp.abs(ref))) + 1e-6
    assert err <= 0.1 * scale + 1e-3, (err, scale)

    print("KERNEL_OK")
</pallas_src>

<mosaic_0001>
module attributes {stable_mosaic.version = 11 : i64} {
  func.func @_fused_kernel(%arg0: i32, %arg1: memref<10x192xf32, #tpu.memory_space<vmem>>, %arg2: memref<192x32xbf16, #tpu.memory_space<vmem>>, %arg3: memref<10x32xf32, #tpu.memory_space<vmem>>, %arg4: memref<4x32xf32, #tpu.memory_space<vmem>>, %arg5: memref<32x16xbf16, #tpu.memory_space<vmem>>, %arg6: memref<1x32x96xbf16, #tpu.memory_space<vmem>>, %arg7: memref<1x32x32xbf16, #tpu.memory_space<vmem>>, %arg8: memref<1x32x128xbf16, #tpu.memory_space<vmem>>, %arg9: memref<1x128x32xbf16, #tpu.memory_space<vmem>>, %arg10: memref<1x8x128xf32, #tpu.memory_space<vmem>>, %arg11: memref<2x16xf32, #tpu.memory_space<vmem>>, %arg12: memref<10x32xf32, #tpu.memory_space<vmem>>) attributes {dimension_semantics = [#tpu.dimension_semantics<arbitrary>], iteration_bounds = array<i64: 2>, scalar_prefetch = 0 : i64, scratch_operands = 1 : i64, tpu.core_type = #tpu.core_type<tc>, window_params = [{pipeline_mode = #tpu.pipeline_mode<synchronous>, transform_indices = @transform_0, window_bounds = array<i64: 10, 192>}, {pipeline_mode = #tpu.pipeline_mode<synchronous>, transform_indices = @transform_1, window_bounds = array<i64: 192, 32>}, {pipeline_mode = #tpu.pipeline_mode<synchronous>, transform_indices = @transform_2, window_bounds = array<i64: 10, 32>}, {pipeline_mode = #tpu.pipeline_mode<synchronous>, transform_indices = @transform_3, window_bounds = array<i64: 4, 32>}, {pipeline_mode = #tpu.pipeline_mode<synchronous>, transform_indices = @transform_4, window_bounds = array<i64: 32, 16>}, {transform_indices = @transform_5, window_bounds = array<i64: 1, 32, 96>}, {transform_indices = @transform_6, window_bounds = array<i64: 1, 32, 32>}, {transform_indices = @transform_7, window_bounds = array<i64: 1, 32, 128>}, {transform_indices = @transform_8, window_bounds = array<i64: 1, 128, 32>}, {transform_indices = @transform_9, window_bounds = array<i64: 1, 8, 128>}, {pipeline_mode = #tpu.pipeline_mode<synchronous>, transform_indices = @transform_10, window_bounds = array<i64: 2, 16>}]} {
    %c0 = arith.constant 0 : index
    %c0_0 = arith.constant 0 : index
    %0 = vector.load %arg4[%c0, %c0_0] : memref<4x32xf32, #tpu.memory_space<vmem>>, vector<4x32xf32>
    %c0_i32 = arith.constant 0 : i32
    %1 = arith.cmpi eq, %arg0, %c0_i32 : i32
    %2 = arith.extui %1 : i1 to i32
    %c0_i32_1 = arith.constant 0 : i32
    %3 = arith.cmpi ne, %2, %c0_i32_1 : i32
    scf.if %3 {
      %c0_69 = arith.constant 0 : index
      %c0_70 = arith.constant 0 : index
      %229 = vector.load %arg1[%c0_69, %c0_70] : memref<10x192xf32, #tpu.memory_space<vmem>>, vector<10x192xf32>
      %230 = arith.truncf %229 : vector<10x192xf32> to vector<10x192xbf16>
      %c0_71 = arith.constant 0 : index
      %c0_72 = arith.constant 0 : index
      %231 = vector.load %arg2[%c0_71, %c0_72] : memref<192x32xbf16, #tpu.memory_space<vmem>>, vector<192x32xbf16>
      %cst_73 = arith.constant dense<0.000000e+00> : vector<10x32xf32>
      %232 = tpu.matmul %230, %231, %cst_73 {dimension_numbers = #tpu.dot_dimension_numbers<[1], [0], [0], [1], [0, 0, 1, 1], [], []>} : vector<10x192xbf16>, vector<192x32xbf16>, vector<10x32xf32> -> vector<10x32xf32>
      %c0_74 = arith.constant 0 : index
      %c0_75 = arith.constant 0 : index
      %233 = vector.load %arg3[%c0_74, %c0_75] : memref<10x32xf32, #tpu.memory_space<vmem>>, vector<10x32xf32>
      %234 = arith.addf %232, %233 : vector<10x32xf32>
      %235 = vector.extract_strided_slice %0 {offsets = [0, 0], sizes = [1, 32], strides = [1, 1]} : vector<4x32xf32> to vector<1x32xf32>
      %236 = vector.extract_strided_slice %0 {offsets = [1, 0], sizes = [1, 32], strides = [1, 1]} : vector<4x32xf32> to vector<1x32xf32>
      %cst_76 = arith.constant dense<0.000000e+00> : vector<10xf32>
      %237 = vector.multi_reduction <add>, %234, %cst_76 [1] : vector<10x32xf32> to vector<10xf32>
      %238 = vector.shape_cast %237 : vector<10xf32> to vector<10x1xf32>
      %cst_77 = arith.constant 3.200000e+01 : f32
      %239 = vector.broadcast %cst_77 : f32 to vector<10x1xf32>
      %240 = arith.divf %238, %239 : vector<10x1xf32>
      %241 = vector.broadcast %240 : vector<10x1xf32> to vector<10x32xf32>
      %242 = arith.subf %234, %241 : vector<10x32xf32>
      %243 = arith.mulf %242, %242 : vector<10x32xf32>
      %cst_78 = arith.constant dense<0.000000e+00> : vector<10xf32>
      %244 = vector.multi_reduction <add>, %243, %cst_78 [1] : vector<10x32xf32> to vector<10xf32>
      %245 = vector.shape_cast %244 : vector<10xf32> to vector<10x1xf32>
      %cst_79 = arith.constant 3.200000e+01 : f32
      %246 = vector.broadcast %cst_79 : f32 to vector<10x1xf32>
      %247 = arith.divf %245, %246 : vector<10x1xf32>
      %248 = vector.broadcast %240 : vector<10x1xf32> to vector<10x32xf32>
      %249 = arith.subf %234, %248 : vector<10x32xf32>
      %cst_80 = arith.constant 9.99999974E-6 : f32
      %250 = vector.broadcast %cst_80 : f32 to vector<10x1xf32>
      %251 = arith.addf %247, %250 : vector<10x1xf32>
      %252 = math.rsqrt %251 : vector<10x1xf32>
      %253 = vector.broadcast %252 : vector<10x1xf32> to vector<10x32xf32>
      %254 = arith.mulf %249, %253 : vector<10x32xf32>
      %255 = vector.broadcast %235 : vector<1x32xf32> to vector<10x32xf32>
      %256 = arith.mulf %254, %255 : vector<10x32xf32>
      %257 = vector.broadcast %236 : vector<1x32xf32> to vector<10x32xf32>
      %258 = arith.addf %256, %257 : vector<10x32xf32>
      %c0_81 = arith.constant 0 : index
      %c0_82 = arith.constant 0 : index
      %259 = vector.load %arg12[%c0_81, %c0_82] : memref<10x32xf32, #tpu.memory_space<vmem>>, vector<10x32xf32>
      tpu.vector_store %arg12[%c0_81, %c0_82], %258 {strides = array<i32>} : memref<10x32xf32, #tpu.memory_space<vmem>>, vector<10x32xf32>,
    } else {
    }
    %c0_2 = arith.constant 0 : index
    %c0_3 = arith.constant 0 : index
    %4 = vector.load %arg12[%c0_2, %c0_3] : memref<10x32xf32, #tpu.memory_space<vmem>>, vector<10x32xf32>
    %c0_4 = arith.constant 0 : index
    %c0_5 = arith.constant 0 : index
    %c0_6 = arith.constant 0 : index
    %5 = vector.load %arg10[%c0_4, %c0_5, %c0_6] : memref<1x8x128xf32, #tpu.memory_space<vmem>>, vector<1x8x128xf32>
    %6 = vector.shape_cast %5 : vector<1x8x128xf32> to vector<8x128xf32>
    %7 = vector.extract_strided_slice %6 {offsets = [0, 0], sizes = [1, 32], strides = [1, 1]} : vector<8x128xf32> to vector<1x32xf32>
    %8 = vector.extract_strided_slice %6 {offsets = [1, 0], sizes = [1, 32], strides = [1, 1]} : vector<8x128xf32> to vector<1x32xf32>
    %9 = vector.extract_strided_slice %6 {offsets = [2, 0], sizes = [1, 96], strides = [1, 1]} : vector<8x128xf32> to vector<1x96xf32>
    %10 = vector.extract_strided_slice %6 {offsets = [3, 0], sizes = [1, 32], strides = [1, 1]} : vector<8x128xf32> to vector<1x32xf32>
    %11 = vector.extract_strided_slice %6 {offsets = [4, 0], sizes = [1, 32], strides = [1, 1]} : vector<8x128xf32> to vector<1x32xf32>
    %12 = vector.extract_strided_slice %6 {offsets = [5, 0], sizes = [1, 32], strides = [1, 1]} : vector<8x128xf32> to vector<1x32xf32>
    %13 = vector.extract_strided_slice %6 {offsets = [6, 0], sizes = [1, 128], strides = [1, 1]} : vector<8x128xf32> to vector<1x128xf32>
    %14 = vector.extract_strided_slice %6 {offsets = [7, 0], sizes = [1, 32], strides = [1, 1]} : vector<8x128xf32> to vector<1x32xf32>
    %cst = arith.constant dense<0.000000e+00> : vector<10xf32>
    %15 = vector.multi_reduction <add>, %4, %cst [1] : vector<10x32xf32> to vector<10xf32>
    %16 = vector.shape_cast %15 : vector<10xf32> to vector<10x1xf32>
    %cst_7 = arith.constant 3.200000e+01 : f32
    %17 = vector.broadcast %cst_7 : f32 to vector<10x1xf32>
    %18 = arith.divf %16, %17 : vector<10x1xf32>
    %19 = vector.broadcast %18 : vector<10x1xf32> to vector<10x32xf32>
    %20 = arith.subf %4, %19 : vector<10x32xf32>
    %21 = arith.mulf %20, %20 : vector<10x32xf32>
    %cst_8 = arith.constant dense<0.000000e+00> : vector<10xf32>
    %22 = vector.multi_reduction <add>, %21, %cst_8 [1] : vector<10x32xf32> to vector<10xf32>
    %23 = vector.shape_cast %22 : vector<10xf32> to vector<10x1xf32>
    %cst_9 = arith.constant 3.200000e+01 : f32
    %24 = vector.broadcast %cst_9 : f32 to vector<10x1xf32>
    %25 = arith.divf %23, %24 : vector<10x1xf32>
    %26 = vector.broadcast %18 : vector<10x1xf32> to vector<10x32xf32>
    %27 = arith.subf %4, %26 : vector<10x32xf32>
    %cst_10 = arith.constant 9.99999974E-6 : f32
    %28 = vector.broadcast %cst_10 : f32 to vector<10x1xf32>
    %29 = arith.addf %25, %28 : vector<10x1xf32>
    %30 = math.rsqrt %29 : vector<10x1xf32>
    %31 = vector.broadcast %30 : vector<10x1xf32> to vector<10x32xf32>
    %32 = arith.mulf %27, %31 : vector<10x32xf32>
    %33 = vector.broadcast %7 : vector<1x32xf32> to vector<10x32xf32>
    %34 = arith.mulf %32, %33 : vector<10x32xf32>
    %35 = vector.broadcast %8 : vector<1x32xf32> to vector<10x32xf32>
    %36 = arith.addf %34, %35 : vector<10x32xf32>
    %37 = arith.truncf %36 : vector<10x32xf32> to vector<10x32xbf16>
    %c0_11 = arith.constant 0 : index
    %c0_12 = arith.constant 0 : index
    %c0_13 = arith.constant 0 : index
    %38 = vector.load %arg6[%c0_11, %c0_12, %c0_13] : memref<1x32x96xbf16, #tpu.memory_space<vmem>>, vector<1x32x96xbf16>
    %39 = vector.shape_cast %38 : vector<1x32x96xbf16> to vector<32x96xbf16>
    %cst_14 = arith.constant dense<0.000000e+00> : vector<10x96xf32>
    %40 = tpu.matmul %37, %39, %cst_14 {dimension_numbers = #tpu.dot_dimension_numbers<[1], [0], [0], [1], [0, 0, 1, 1], [], []>} : vector<10x32xbf16>, vector<32x96xbf16>, vector<10x96xf32> -> vector<10x96xf32>
    %41 = vector.broadcast %9 : vector<1x96xf32> to vector<10x96xf32>
    %42 = arith.addf %40, %41 : vector<10x96xf32>
    %43 = arith.truncf %42 : vector<10x96xf32> to vector<10x96xbf16>
    %44 = vector.extract_strided_slice %43 {offsets = [0, 0], sizes = [5, 8], strides = [1, 1]} : vector<10x96xbf16> to vector<5x8xbf16>
    %45 = vector.extract_strided_slice %43 {offsets = [0, 32], sizes = [5, 8], strides = [1, 1]} : vector<10x96xbf16> to vector<5x8xbf16>
    %46 = vector.extract_strided_slice %43 {offsets = [0, 64], sizes = [5, 8], strides = [1, 1]} : vector<10x96xbf16> to vector<5x8xbf16>
    %cst_15 = arith.constant dense<0.000000e+00> : vector<5x5xf32>
    %47 = tpu.matmul %44, %45, %cst_15 {dimension_numbers = #tpu.dot_dimension_numbers<[1], [1], [0], [0], [0, 0, 1, 0], [], []>} : vector<5x8xbf16>, vector<5x8xbf16>, vector<5x5xf32> -> vector<5x5xf32>
    %cst_16 = arith.constant dense<0xFF800000> : vector<5xf32>
    %48 = vector.multi_reduction <maximumf>, %47, %cst_16 [1] : vector<5x5xf32> to vector<5xf32>
    %49 = vector.shape_cast %48 : vector<5xf32> to vector<5x1xf32>
    %50 = vector.broadcast %49 : vector<5x1xf32> to vector<5x5xf32>
    %51 = arith.subf %47, %50 : vector<5x5xf32>
    %52 = math.exp %51 : vector<5x5xf32>
    %cst_17 = arith.constant dense<0.000000e+00> : vector<5xf32>
    %53 = vector.multi_reduction <add>, %52, %cst_17 [1] : vector<5x5xf32> to vector<5xf32>
    %54 = vector.shape_cast %53 : vector<5xf32> to vector<5x1xf32>
    %55 = tpu.reciprocal %54 {approx = true} : vector<5x1xf32> -> vector<5x1xf32>
    %56 = vector.broadcast %55 : vector<5x1xf32> to vector<5x5xf32>
    %57 = arith.mulf %52, %56 : vector<5x5xf32>
    %58 = arith.truncf %57 : vector<5x5xf32> to vector<5x5xbf16>
    %cst_18 = arith.constant dense<0.000000e+00> : vector<5x8xf32>
    %59 = tpu.matmul %58, %46, %cst_18 {dimension_numbers = #tpu.dot_dimension_numbers<[1], [0], [0], [1], [0, 0, 1, 1], [], []>} : vector<5x5xbf16>, vector<5x8xbf16>, vector<5x8xf32> -> vector<5x8xf32>
    %60 = vector.extract_strided_slice %43 {offsets = [0, 8], sizes = [5, 8], strides = [1, 1]} : vector<10x96xbf16> to vector<5x8xbf16>
    %61 = vector.extract_strided_slice %43 {offsets = [0, 40], sizes = [5, 8], strides = [1, 1]} : vector<10x96xbf16> to vector<5x8xbf16>
    %62 = vector.extract_strided_slice %43 {offsets = [0, 72], sizes = [5, 8], strides = [1, 1]} : vector<10x96xbf16> to vector<5x8xbf16>
    %cst_19 = arith.constant dense<0.000000e+00> : vector<5x5xf32>
    %63 = tpu.matmul %60, %61, %cst_19 {dimension_numbers = #tpu.dot_dimension_numbers<[1], [1], [0], [0], [0, 0, 1, 0], [], []>} : vector<5x8xbf16>, vector<5x8xbf16>, vector<5x5xf32> -> vector<5x5xf32>
    %cst_20 = arith.constant dense<0xFF800000> : vector<5xf32>
    %64 = vector.multi_reduction <maximumf>, %63, %cst_20 [1] : vector<5x5xf32> to vector<5xf32>
    %65 = vector.shape_cast %64 : vector<5xf32> to vector<5x1xf32>
    %66 = vector.broadcast %65 : vector<5x1xf32> to vector<5x5xf32>
    %67 = arith.subf %63, %66 : vector<5x5xf32>
    %68 = math.exp %67 : vector<5x5xf32>
    %cst_21 = arith.constant dense<0.000000e+00> : vector<5xf32>
    %69 = vector.multi_reduction <add>, %68, %cst_21 [1] : vector<5x5xf32> to vector<5xf32>
    %70 = vector.shape_cast %69 : vector<5xf32> to vector<5x1xf32>
    %71 = tpu.reciprocal %70 {approx = true} : vector<5x1xf32> -> vector<5x1xf32>
    %72 = vector.broadcast %71 : vector<5x1xf32> to vector<5x5xf32>
    %73 = arith.mulf %68, %72 : vector<5x5xf32>
    %74 = arith.truncf %73 : vector<5x5xf32> to vector<5x5xbf16>
    %cst_22 = arith.constant dense<0.000000e+00> : vector<5x8xf32>
    %75 = tpu.matmul %74, %62, %cst_22 {dimension_numbers = #tpu.dot_dimension_numbers<[1], [0], [0], [1], [0, 0, 1, 1], [], []>} : vector<5x5xbf16>, vector<5x8xbf16>, vector<5x8xf32> -> vector<5x8xf32>
    %76 = vector.extract_strided_slice %43 {offsets = [0, 16], sizes = [5, 8], strides = [1, 1]} : vector<10x96xbf16> to vector<5x8xbf16>
    %77 = vector.extract_strided_slice %43 {offsets = [0, 48], sizes = [5, 8], strides = [1, 1]} : vector<10x96xbf16> to vector<5x8xbf16>
    %78 = vector.extract_strided_slice %43 {offsets = [0, 80], sizes = [5, 8], strides = [1, 1]} : vector<10x96xbf16> to vector<5x8xbf16>
    %cst_23 = arith.constant dense<0.000000e+00> : vector<5x5xf32>
    %79 = tpu.matmul %76, %77, %cst_23 {dimension_numbers = #tpu.dot_dimension_numbers<[1], [1], [0], [0], [0, 0, 1, 0], [], []>} : vector<5x8xbf16>, vector<5x8xbf16>, vector<5x5xf32> -> vector<5x5xf32>
    %cst_24 = arith.constant dense<0xFF800000> : vector<5xf32>
    %80 = vector.multi_reduction <maximumf>, %79, %cst_24 [1] : vector<5x5xf32> to vector<5xf32>
    %81 = vector.shape_cast %80 : vector<5xf32> to vector<5x1xf32>
    %82 = vector.broadcast %81 : vector<5x1xf32> to vector<5x5xf32>
    %83 = arith.subf %79, %82 : vector<5x5xf32>
    %84 = math.exp %83 : vector<5x5xf32>
    %cst_25 = arith.constant dense<0.000000e+00> : vector<5xf32>
    %85 = vector.multi_reduction <add>, %84, %cst_25 [1] : vector<5x5xf32> to vector<5xf32>
    %86 = vector.shape_cast %85 : vector<5xf32> to vector<5x1xf32>
    %87 = tpu.reciprocal %86 {approx = true} : vector<5x1xf32> -> vector<5x1xf32>
    %88 = vector.broadcast %87 : vector<5x1xf32> to vector<5x5xf32>
    %89 = arith.mulf %84, %88 : vector<5x5xf32>
    %90 = arith.truncf %89 : vector<5x5xf32> to vector<5x5xbf16>
    %cst_26 = arith.constant dense<0.000000e+00> : vector<5x8xf32>
    %91 = tpu.matmul %90, %78, %cst_26 {dimension_numbers = #tpu.dot_dimension_numbers<[1], [0], [0], [1], [0, 0, 1, 1], [], []>} : vector<5x5xbf16>, vector<5x8xbf16>, vector<5x8xf32> -> vector<5x8xf32>
    %92 = vector.extract_strided_slice %43 {offsets = [0, 24], sizes = [5, 8], strides = [1, 1]} : vector<10x96xbf16> to vector<5x8xbf16>
    %93 = vector.extract_strided_slice %43 {offsets = [0, 56], sizes = [5, 8], strides = [1, 1]} : vector<10x96xbf16> to vector<5x8xbf16>
    %94 = vector.extract_strided_slice %43 {offsets = [0, 88], sizes = [5, 8], strides = [1, 1]} : vector<10x96xbf16> to vector<5x8xbf16>
    %cst_27 = arith.constant dense<0.000000e+00> : vector<5x5xf32>
    %95 = tpu.matmul %92, %93, %cst_27 {dimension_numbers = #tpu.dot_dimension_numbers<[1], [1], [0], [0], [0, 0, 1, 0], [], []>} : vector<5x8xbf16>, vector<5x8xbf16>, vector<5x5xf32> -> vector<5x5xf32>
    %cst_28 = arith.constant dense<0xFF800000> : vector<5xf32>
    %96 = vector.multi_reduction <maximumf>, %95, %cst_28 [1] : vector<5x5xf32> to vector<5xf32>
    %97 = vector.shape_cast %96 : vector<5xf32> to vector<5x1xf32>
    %98 = vector.broadcast %97 : vector<5x1xf32> to vector<5x5xf32>
    %99 = arith.subf %95, %98 : vector<5x5xf32>
    %100 = math.exp %99 : vector<5x5xf32>
    %cst_29 = arith.constant dense<0.000000e+00> : vector<5xf32>
    %101 = vector.multi_reduction <add>, %100, %cst_29 [1] : vector<5x5xf32> to vector<5xf32>
    %102 = vector.shape_cast %101 : vector<5xf32> to vector<5x1xf32>
    %103 = tpu.reciprocal %102 {approx = true} : vector<5x1xf32> -> vector<5x1xf32>
    %104 = vector.broadcast %103 : vector<5x1xf32> to vector<5x5xf32>
    %105 = arith.mulf %100, %104 : vector<5x5xf32>
    %106 = arith.truncf %105 : vector<5x5xf32> to vector<5x5xbf16>
    %cst_30 = arith.constant dense<0.000000e+00> : vector<5x8xf32>
    %107 = tpu.matmul %106, %94, %cst_30 {dimension_numbers = #tpu.dot_dimension_numbers<[1], [0], [0], [1], [0, 0, 1, 1], [], []>} : vector<5x5xbf16>, vector<5x8xbf16>, vector<5x8xf32> -> vector<5x8xf32>
    %108 = tpu.concatenate %59, %75, %91, %107 in 1 : vector<5x8xf32>, vector<5x8xf32>, vector<5x8xf32>, vector<5x8xf32> -> vector<5x32xf32>
    %109 = vector.extract_strided_slice %43 {offsets = [5, 0], sizes = [5, 8], strides = [1, 1]} : vector<10x96xbf16> to vector<5x8xbf16>
    %110 = vector.extract_strided_slice %43 {offsets = [5, 32], sizes = [5, 8], strides = [1, 1]} : vector<10x96xbf16> to vector<5x8xbf16>
    %111 = vector.extract_strided_slice %43 {offsets = [5, 64], sizes = [5, 8], strides = [1, 1]} : vector<10x96xbf16> to vector<5x8xbf16>
    %cst_31 = arith.constant dense<0.000000e+00> : vector<5x5xf32>
    %112 = tpu.matmul %109, %110, %cst_31 {dimension_numbers = #tpu.dot_dimension_numbers<[1], [1], [0], [0], [0, 0, 1, 0], [], []>} : vector<5x8xbf16>, vector<5x8xbf16>, vector<5x5xf32> -> vector<5x5xf32>
    %cst_32 = arith.constant dense<0xFF800000> : vector<5xf32>
    %113 = vector.multi_reduction <maximumf>, %112, %cst_32 [1] : vector<5x5xf32> to vector<5xf32>
    %114 = vector.shape_cast %113 : vector<5xf32> to vector<5x1xf32>
    %115 = vector.broadcast %114 : vector<5x1xf32> to vector<5x5xf32>
    %116 = arith.subf %112, %115 : vector<5x5xf32>
    %117 = math.exp %116 : vector<5x5xf32>
    %cst_33 = arith.constant dense<0.000000e+00> : vector<5xf32>
    %118 = vector.multi_reduction <add>, %117, %cst_33 [1] : vector<5x5xf32> to vector<5xf32>
    %119 = vector.shape_cast %118 : vector<5xf32> to vector<5x1xf32>
    %120 = tpu.reciprocal %119 {approx = true} : vector<5x1xf32> -> vector<5x1xf32>
    %121 = vector.broadcast %120 : vector<5x1xf32> to vector<5x5xf32>
    %122 = arith.mulf %117, %121 : vector<5x5xf32>
    %123 = arith.truncf %122 : vector<5x5xf32> to vector<5x5xbf16>
    %cst_34 = arith.constant dense<0.000000e+00> : vector<5x8xf32>
    %124 = tpu.matmul %123, %111, %cst_34 {dimension_numbers = #tpu.dot_dimension_numbers<[1], [0], [0], [1], [0, 0, 1, 1], [], []>} : vector<5x5xbf16>, vector<5x8xbf16>, vector<5x8xf32> -> vector<5x8xf32>
    %125 = vector.extract_strided_slice %43 {offsets = [5, 8], sizes = [5, 8], strides = [1, 1]} : vector<10x96xbf16> to vector<5x8xbf16>
    %126 = vector.extract_strided_slice %43 {offsets = [5, 40], sizes = [5, 8], strides = [1, 1]} : vector<10x96xbf16> to vector<5x8xbf16>
    %127 = vector.extract_strided_slice %43 {offsets = [5, 72], sizes = [5, 8], strides = [1, 1]} : vector<10x96xbf16> to vector<5x8xbf16>
    %cst_35 = arith.constant dense<0.000000e+00> : vector<5x5xf32>
    %128 = tpu.matmul %125, %126, %cst_35 {dimension_numbers = #tpu.dot_dimension_numbers<[1], [1], [0], [0], [0, 0, 1, 0], [], []>} : vector<5x8xbf16>, vector<5x8xbf16>, vector<5x5xf32> -> vector<5x5xf32>
    %cst_36 = arith.constant dense<0xFF800000> : vector<5xf32>
    %129 = vector.multi_reduction <maximumf>, %128, %cst_36 [1] : vector<5x5xf32> to vector<5xf32>
    %130 = vector.shape_cast %129 : vector<5xf32> to vector<5x1xf32>
    %131 = vector.broadcast %130 : vector<5x1xf32> to vector<5x5xf32>
    %132 = arith.subf %128, %131 : vector<5x5xf32>
    %133 = math.exp %132 : vector<5x5xf32>
    %cst_37 = arith.constant dense<0.000000e+00> : vector<5xf32>
    %134 = vector.multi_reduction <add>, %133, %cst_37 [1] : vector<5x5xf32> to vector<5xf32>
    %135 = vector.shape_cast %134 : vector<5xf32> to vector<5x1xf32>
    %136 = tpu.reciprocal %135 {approx = true} : vector<5x1xf32> -> vector<5x1xf32>
    %137 = vector.broadcast %136 : vector<5x1xf32> to vector<5x5xf32>
    %138 = arith.mulf %133, %137 : vector<5x5xf32>
    %139 = arith.truncf %138 : vector<5x5xf32> to vector<5x5xbf16>
    %cst_38 = arith.constant dense<0.000000e+00> : vector<5x8xf32>
    %140 = tpu.matmul %139, %127, %cst_38 {dimension_numbers = #tpu.dot_dimension_numbers<[1], [0], [0], [1], [0, 0, 1, 1], [], []>} : vector<5x5xbf16>, vector<5x8xbf16>, vector<5x8xf32> -> vector<5x8xf32>
    %141 = vector.extract_strided_slice %43 {offsets = [5, 16], sizes = [5, 8], strides = [1, 1]} : vector<10x96xbf16> to vector<5x8xbf16>
    %142 = vector.extract_strided_slice %43 {offsets = [5, 48], sizes = [5, 8], strides = [1, 1]} : vector<10x96xbf16> to vector<5x8xbf16>
    %143 = vector.extract_strided_slice %43 {offsets = [5, 80], sizes = [5, 8], strides = [1, 1]} : vector<10x96xbf16> to vector<5x8xbf16>
    %cst_39 = arith.constant dense<0.000000e+00> : vector<5x5xf32>
    %144 = tpu.matmul %141, %142, %cst_39 {dimension_numbers = #tpu.dot_dimension_numbers<[1], [1], [0], [0], [0, 0, 1, 0], [], []>} : vector<5x8xbf16>, vector<5x8xbf16>, vector<5x5xf32> -> vector<5x5xf32>
    %cst_40 = arith.constant dense<0xFF800000> : vector<5xf32>
    %145 = vector.multi_reduction <maximumf>, %144, %cst_40 [1] : vector<5x5xf32> to vector<5xf32>
    %146 = vector.shape_cast %145 : vector<5xf32> to vector<5x1xf32>
    %147 = vector.broadcast %146 : vector<5x1xf32> to vector<5x5xf32>
    %148 = arith.subf %144, %147 : vector<5x5xf32>
    %149 = math.exp %148 : vector<5x5xf32>
    %cst_41 = arith.constant dense<0.000000e+00> : vector<5xf32>
    %150 = vector.multi_reduction <add>, %149, %cst_41 [1] : vector<5x5xf32> to vector<5xf32>
    %151 = vector.shape_cast %150 : vector<5xf32> to vector<5x1xf32>
    %152 = tpu.reciprocal %151 {approx = true} : vector<5x1xf32> -> vector<5x1xf32>
    %153 = vector.broadcast %152 : vector<5x1xf32> to vector<5x5xf32>
    %154 = arith.mulf %149, %153 : vector<5x5xf32>
    %155 = arith.truncf %154 : vector<5x5xf32> to vector<5x5xbf16>
    %cst_42 = arith.constant dense<0.000000e+00> : vector<5x8xf32>
    %156 = tpu.matmul %155, %143, %cst_42 {dimension_numbers = #tpu.dot_dimension_numbers<[1], [0], [0], [1], [0, 0, 1, 1], [], []>} : vector<5x5xbf16>, vector<5x8xbf16>, vector<5x8xf32> -> vector<5x8xf32>
    %157 = vector.extract_strided_slice %43 {offsets = [5, 24], sizes = [5, 8], strides = [1, 1]} : vector<10x96xbf16> to vector<5x8xbf16>
    %158 = vector.extract_strided_slice %43 {offsets = [5, 56], sizes = [5, 8], strides = [1, 1]} : vector<10x96xbf16> to vector<5x8xbf16>
    %159 = vector.extract_strided_slice %43 {offsets = [5, 88], sizes = [5, 8], strides = [1, 1]} : vector<10x96xbf16> to vector<5x8xbf16>
    %cst_43 = arith.constant dense<0.000000e+00> : vector<5x5xf32>
    %160 = tpu.matmul %157, %158, %cst_43 {dimension_numbers = #tpu.dot_dimension_numbers<[1], [1], [0], [0], [0, 0, 1, 0], [], []>} : vector<5x8xbf16>, vector<5x8xbf16>, vector<5x5xf32> -> vector<5x5xf32>
    %cst_44 = arith.constant dense<0xFF800000> : vector<5xf32>
    %161 = vector.multi_reduction <maximumf>, %160, %cst_44 [1] : vector<5x5xf32> to vector<5xf32>
    %162 = vector.shape_cast %161 : vector<5xf32> to vector<5x1xf32>
    %163 = vector.broadcast %162 : vector<5x1xf32> to vector<5x5xf32>
    %164 = arith.subf %160, %163 : vector<5x5xf32>
    %165 = math.exp %164 : vector<5x5xf32>
    %cst_45 = arith.constant dense<0.000000e+00> : vector<5xf32>
    %166 = vector.multi_reduction <add>, %165, %cst_45 [1] : vector<5x5xf32> to vector<5xf32>
    %167 = vector.shape_cast %166 : vector<5xf32> to vector<5x1xf32>
    %168 = tpu.reciprocal %167 {approx = true} : vector<5x1xf32> -> vector<5x1xf32>
    %169 = vector.broadcast %168 : vector<5x1xf32> to vector<5x5xf32>
    %170 = arith.mulf %165, %169 : vector<5x5xf32>
    %171 = arith.truncf %170 : vector<5x5xf32> to vector<5x5xbf16>
    %cst_46 = arith.constant dense<0.000000e+00> : vector<5x8xf32>
    %172 = tpu.matmul %171, %159, %cst_46 {dimension_numbers = #tpu.dot_dimension_numbers<[1], [0], [0], [1], [0, 0, 1, 1], [], []>} : vector<5x5xbf16>, vector<5x8xbf16>, vector<5x8xf32> -> vector<5x8xf32>
    %173 = tpu.concatenate %124, %140, %156, %172 in 1 : vector<5x8xf32>, vector<5x8xf32>, vector<5x8xf32>, vector<5x8xf32> -> vector<5x32xf32>
    %174 = tpu.concatenate %108, %173 in 0 : vector<5x32xf32>, vector<5x32xf32> -> vector<10x32xf32>
    %175 = arith.truncf %174 : vector<10x32xf32> to vector<10x32xbf16>
    %c0_47 = arith.constant 0 : index
    %c0_48 = arith.constant 0 : index
    %c0_49 = arith.constant 0 : index
    %176 = vector.load %arg7[%c0_47, %c0_48, %c0_49] : memref<1x32x32xbf16, #tpu.memory_space<vmem>>, vector<1x32x32xbf16>
    %177 = vector.shape_cast %176 : vector<1x32x32xbf16> to vector<32x32xbf16>
    %cst_50 = arith.constant dense<0.000000e+00> : vector<10x32xf32>
    %178 = tpu.matmul %175, %177, %cst_50 {dimension_numbers = #tpu.dot_dimension_numbers<[1], [0], [0], [1], [0, 0, 1, 1], [], []>} : vector<10x32xbf16>, vector<32x32xbf16>, vector<10x32xf32> -> vector<10x32xf32>
    %179 = arith.addf %4, %178 : vector<10x32xf32>
    %180 = vector.broadcast %10 : vector<1x32xf32> to vector<10x32xf32>
    %181 = arith.addf %179, %180 : vector<10x32xf32>
    %cst_51 = arith.constant dense<0.000000e+00> : vector<10xf32>
    %182 = vector.multi_reduction <add>, %181, %cst_51 [1] : vector<10x32xf32> to vector<10xf32>
    %183 = vector.shape_cast %182 : vector<10xf32> to vector<10x1xf32>
    %cst_52 = arith.constant 3.200000e+01 : f32
    %184 = vector.broadcast %cst_52 : f32 to vector<10x1xf32>
    %185 = arith.divf %183, %184 : vector<10x1xf32>
    %186 = vector.broadcast %185 : vector<10x1xf32> to vector<10x32xf32>
    %187 = arith.subf %181, %186 : vector<10x32xf32>
    %188 = arith.mulf %187, %187 : vector<10x32xf32>
    %cst_53 = arith.constant dense<0.000000e+00> : vector<10xf32>
    %189 = vector.multi_reduction <add>, %188, %cst_53 [1] : vector<10x32xf32> to vector<10xf32>
    %190 = vector.shape_cast %189 : vector<10xf32> to vector<10x1xf32>
    %cst_54 = arith.constant 3.200000e+01 : f32
    %191 = vector.broadcast %cst_54 : f32 to vector<10x1xf32>
    %192 = arith.divf %190, %191 : vector<10x1xf32>
    %193 = vector.broadcast %185 : vector<10x1xf32> to vector<10x32xf32>
    %194 = arith.subf %181, %193 : vector<10x32xf32>
    %cst_55 = arith.constant 9.99999974E-6 : f32
    %195 = vector.broadcast %cst_55 : f32 to vector<10x1xf32>
    %196 = arith.addf %192, %195 : vector<10x1xf32>
    %197 = math.rsqrt %196 : vector<10x1xf32>
    %198 = vector.broadcast %197 : vector<10x1xf32> to vector<10x32xf32>
    %199 = arith.mulf %194, %198 : vector<10x32xf32>
    %200 = vector.broadcast %11 : vector<1x32xf32> to vector<10x32xf32>
    %201 = arith.mulf %199, %200 : vector<10x32xf32>
    %202 = vector.broadcast %12 : vector<1x32xf32> to vector<10x32xf32>
    %203 = arith.addf %201, %202 : vector<10x32xf32>
    %204 = arith.truncf %203 : vector<10x32xf32> to vector<10x32xbf16>
    %c0_56 = arith.constant 0 : index
    %c0_57 = arith.constant 0 : index
    %c0_58 = arith.constant 0 : index
    %205 = vector.load %arg8[%c0_56, %c0_57, %c0_58] : memref<1x32x128xbf16, #tpu.memory_space<vmem>>, vector<1x32x128xbf16>
    %206 = vector.shape_cast %205 : vector<1x32x128xbf16> to vector<32x128xbf16>
    %cst_59 = arith.constant dense<0.000000e+00> : vector<10x128xf32>
    %207 = tpu.matmul %204, %206, %cst_59 {dimension_numbers = #tpu.dot_dimension_numbers<[1], [0], [0], [1], [0, 0, 1, 1], [], []>} : vector<10x32xbf16>, vector<32x128xbf16>, vector<10x128xf32> -> vector<10x128xf32>
    %208 = vector.broadcast %13 : vector<1x128xf32> to vector<10x128xf32>
    %209 = arith.addf %207, %208 : vector<10x128xf32>
    %cst_60 = arith.constant 1.702000e+00 : f32
    %210 = vector.broadcast %cst_60 : f32 to vector<10x128xf32>
    %211 = arith.mulf %210, %209 : vector<10x128xf32>
    %212 = arith.negf %211 : vector<10x128xf32>
    %213 = math.exp %212 : vector<10x128xf32>
    %cst_61 = arith.constant 1.000000e+00 : f32
    %214 = vector.broadcast %cst_61 : f32 to vector<10x128xf32>
    %215 = arith.addf %214, %213 : vector<10x128xf32>
    %216 = arith.divf %214, %215 : vector<10x128xf32>
    %217 = arith.mulf %209, %216 : vector<10x128xf32>
    %218 = arith.truncf %217 : vector<10x128xf32> to vector<10x128xbf16>
    %c0_62 = arith.constant 0 : index
    %c0_63 = arith.constant 0 : index
    %c0_64 = arith.constant 0 : index
    %219 = vector.load %arg9[%c0_62, %c0_63, %c0_64] : memref<1x128x32xbf16, #tpu.memory_space<vmem>>, vector<1x128x32xbf16>
    %220 = vector.shape_cast %219 : vector<1x128x32xbf16> to vector<128x32xbf16>
    %cst_65 = arith.constant dense<0.000000e+00> : vector<10x32xf32>
    %221 = tpu.matmul %218, %220, %cst_65 {dimension_numbers = #tpu.dot_dimension_numbers<[1], [0], [0], [1], [0, 0, 1, 1], [], []>} : vector<10x128xbf16>, vector<128x32xbf16>, vector<10x32xf32> -> vector<10x32xf32>
    %222 = arith.addf %181, %221 : vector<10x32xf32>
    %223 = vector.broadcast %14 : vector<1x32xf32> to vector<10x32xf32>
    %224 = arith.addf %222, %223 : vector<10x32xf32>
    %c0_66 = arith.constant 0 : index
    %c0_67 = arith.constant 0 : index
    %225 = vector.load %arg12[%c0_66, %c0_67] : memref<10x32xf32, #tpu.memory_space<vmem>>, vector<10x32xf32>
    tpu.vector_store %arg12[%c0_66, %c0_67], %224 {strides = array<i32>} : memref<10x32xf32, #tpu.memory_space<vmem>>, vector<10x32xf32>,
    %c1_i32 = arith.constant 1 : i32
    %226 = arith.cmpi eq, %arg0, %c1_i32 : i32
    %227 = arith.extui %226 : i1 to i32
    %c0_i32_68 = arith.constant 0 : i32
    %228 = arith.cmpi ne, %227, %c0_i32_68 : i32
    scf.if %228 {
      %229 = vector.extract_strided_slice %224 {offsets = [0, 0], sizes = [1, 32], strides = [1, 1]} : vector<10x32xf32> to vector<1x32xf32>
      %230 = vector.extract_strided_slice %224 {offsets = [5, 0], sizes = [1, 32], strides = [1, 1]} : vector<10x32xf32> to vector<1x32xf32>
      %231 = tpu.concatenate %229, %230 in 0 : vector<1x32xf32>, vector<1x32xf32> -> vector<2x32xf32>
      %232 = vector.extract_strided_slice %0 {offsets = [2, 0], sizes = [1, 32], strides = [1, 1]} : vector<4x32xf32> to vector<1x32xf32>
      %233 = vector.extract_strided_slice %0 {offsets = [3, 0], sizes = [1, 32], strides = [1, 1]} : vector<4x32xf32> to vector<1x32xf32>
      %cst_69 = arith.constant dense<0.000000e+00> : vector<2xf32>
      %234 = vector.multi_reduction <add>, %231, %cst_69 [1] : vector<2x32xf32> to vector<2xf32>
      %235 = vector.shape_cast %234 : vector<2xf32> to vector<2x1xf32>
      %cst_70 = arith.constant 3.200000e+01 : f32
      %236 = vector.broadcast %cst_70 : f32 to vector<2x1xf32>
      %237 = arith.divf %235, %236 : vector<2x1xf32>
      %238 = vector.broadcast %237 : vector<2x1xf32> to vector<2x32xf32>
      %239 = arith.subf %231, %238 : vector<2x32xf32>
      %240 = arith.mulf %239, %239 : vector<2x32xf32>
      %cst_71 = arith.constant dense<0.000000e+00> : vector<2xf32>
      %241 = vector.multi_reduction <add>, %240, %cst_71 [1] : vector<2x32xf32> to vector<2xf32>
      %242 = vector.shape_cast %241 : vector<2xf32> to vector<2x1xf32>
      %cst_72 = arith.constant 3.200000e+01 : f32
      %243 = vector.broadcast %cst_72 : f32 to vector<2x1xf32>
      %244 = arith.divf %242, %243 : vector<2x1xf32>
      %245 = vector.broadcast %237 : vector<2x1xf32> to vector<2x32xf32>
      %246 = arith.subf %231, %245 : vector<2x32xf32>
      %cst_73 = arith.constant 9.99999974E-6 : f32
      %247 = vector.broadcast %cst_73 : f32 to vector<2x1xf32>
      %248 = arith.addf %244, %247 : vector<2x1xf32>
      %249 = math.rsqrt %248 : vector<2x1xf32>
      %250 = vector.broadcast %249 : vector<2x1xf32> to vector<2x32xf32>
      %251 = arith.mulf %246, %250 : vector<2x32xf32>
      %252 = vector.broadcast %232 : vector<1x32xf32> to vector<2x32xf32>
      %253 = arith.mulf %251, %252 : vector<2x32xf32>
      %254 = vector.broadcast %233 : vector<1x32xf32> to vector<2x32xf32>
      %255 = arith.addf %253, %254 : vector<2x32xf32>
      %256 = arith.truncf %255 : vector<2x32xf32> to vector<2x32xbf16>
      %c0_74 = arith.constant 0 : index
      %c0_75 = arith.constant 0 : index
      %257 = vector.load %arg5[%c0_74, %c0_75] : memref<32x16xbf16, #tpu.memory_space<vmem>>, vector<32x16xbf16>
      %cst_76 = arith.constant dense<0.000000e+00> : vector<2x16xf32>
      %258 = tpu.matmul %256, %257, %cst_76 {dimension_numbers = #tpu.dot_dimension_numbers<[1], [0], [0], [1], [0, 0, 1, 1], [], []>} : vector<2x32xbf16>, vector<32x16xbf16>, vector<2x16xf32> -> vector<2x16xf32>
      %c0_77 = arith.constant 0 : index
      %c0_78 = arith.constant 0 : index
      %259 = vector.load %arg11[%c0_77, %c0_78] : memref<2x16xf32, #tpu.memory_space<vmem>>, vector<2x16xf32>
      tpu.vector_store %arg11[%c0_77, %c0_78], %258 {strides = array<i32>} : memref<2x16xf32, #tpu.memory_space<vmem>>, vector<2x16xf32>,
    } else {
    }
    return
  }
  func.func @transform_0(%arg0: i32) -> (i32, i32) {
    %c0_i32 = arith.constant 0 : i32
    %c0_i32_0 = arith.constant 0 : i32
    %c0_i32_1 = arith.constant 0 : i32
    return %c0_i32, %c0_i32_0 : i32, i32
  }
  func.func @transform_1(%arg0: i32) -> (i32, i32) {
    %c0_i32 = arith.constant 0 : i32
    %c0_i32_0 = arith.constant 0 : i32
    %c0_i32_1 = arith.constant 0 : i32
    return %c0_i32, %c0_i32_0 : i32, i32
  }
  func.func @transform_2(%arg0: i32) -> (i32, i32) {
    %c0_i32 = arith.constant 0 : i32
    %c0_i32_0 = arith.constant 0 : i32
    %c0_i32_1 = arith.constant 0 : i32
    return %c0_i32, %c0_i32_0 : i32, i32
  }
  func.func @transform_3(%arg0: i32) -> (i32, i32) {
    %c0_i32 = arith.constant 0 : i32
    %c0_i32_0 = arith.constant 0 : i32
    %c0_i32_1 = arith.constant 0 : i32
    return %c0_i32, %c0_i32_0 : i32, i32
  }
  func.func @transform_4(%arg0: i32) -> (i32, i32) {
    %c0_i32 = arith.constant 0 : i32
    %c0_i32_0 = arith.constant 0 : i32
    %c0_i32_1 = arith.constant 0 : i32
    return %c0_i32, %c0_i32_0 : i32, i32
  }
  func.func @transform_5(%arg0: i32) -> (i32, i32, i32) {
    %c0_i32 = arith.constant 0 : i32
    %c0_i32_0 = arith.constant 0 : i32
    %c0_i32_1 = arith.constant 0 : i32
    return %arg0, %c0_i32, %c0_i32_0 : i32, i32, i32
  }
  func.func @transform_6(%arg0: i32) -> (i32, i32, i32) {
    %c0_i32 = arith.constant 0 : i32
    %c0_i32_0 = arith.constant 0 : i32
    %c0_i32_1 = arith.constant 0 : i32
    return %arg0, %c0_i32, %c0_i32_0 : i32, i32, i32
  }
  func.func @transform_7(%arg0: i32) -> (i32, i32, i32) {
    %c0_i32 = arith.constant 0 : i32
    %c0_i32_0 = arith.constant 0 : i32
    %c0_i32_1 = arith.constant 0 : i32
    return %arg0, %c0_i32, %c0_i32_0 : i32, i32, i32
  }
  func.func @transform_8(%arg0: i32) -> (i32, i32, i32) {
    %c0_i32 = arith.constant 0 : i32
    %c0_i32_0 = arith.constant 0 : i32
    %c0_i32_1 = arith.constant 0 : i32
    return %arg0, %c0_i32, %c0_i32_0 : i32, i32, i32
  }
  func.func @transform_9(%arg0: i32) -> (i32, i32, i32) {
    %c0_i32 = arith.constant 0 : i32
    %c0_i32_0 = arith.constant 0 : i32
    %c0_i32_1 = arith.constant 0 : i32
    return %arg0, %c0_i32, %c0_i32_0 : i32, i32, i32
  }
  func.func @transform_10(%arg0: i32) -> (i32, i32) {
    %c0_i32 = arith.constant 0 : i32
    %c0_i32_0 = arith.constant 0 : i32
    %c0_i32_1 = arith.constant 0 : i32
    return %c0_i32, %c0_i32_0 : i32, i32
  }
}

</mosaic_0001>

<bundles_post_ra>
// kernel: clip_image_features.1
= control target key start
LH: loop header
LB: loop body
LE: loop exit
PB: predicated region body
PF: predicated region fallthrough
CT: control target
= control target key end

     0   :  { %15 = vsyncpa [#allocation4], 0  ;;  %s2049_s13 = smov 0   ;;  %s2351_s0 = inlined_call_operand.vmem [shape: f32[10,192], index: 0, kind: input, shape index: {}]   ;;  %s2352_s1 = inlined_call_operand.vmem [shape: bf16[192,32], index: 1, kind: input, shape index: {}]   ;;  %s2353_s2 = inlined_call_operand.vmem [shape: f32[10,32], index: 2, kind: input, shape index: {}]   ;;  %s2354_s3 = inlined_call_operand.vmem [shape: f32[4,32], index: 3, kind: input, shape index: {}]   ;;  %s2355_s4 = inlined_call_operand.vmem [shape: bf16[32,16], index: 4, kind: input, shape index: {}]   ;;  %s2356_s5 = inlined_call_operand.vmem [shape: bf16[2,32,96], index: 5, kind: input, shape index: {}]   ;;  %s2357_s6 = inlined_call_operand.vmem [shape: bf16[2,32,32], index: 6, kind: input, shape index: {}]   ;;  %s2358_s7 = inlined_call_operand.vmem [shape: bf16[2,32,128], index: 7, kind: input, shape index: {}]   ;;  %s2359_s8 = inlined_call_operand.vmem [shape: bf16[2,128,32], index: 8, kind: input, shape index: {}]   ;;  %s2360_s9 = inlined_call_operand.vmem [shape: f32[2,8,128], index: 9, kind: input, shape index: {}]   ;;  %s2361_s10 = inlined_call_operand.hbm [shape: f32[2,16], index: 10, kind: output, shape index: {}]  }
   0x1 LB: > { %s2055_s14 = sadd.s32 4294967295, %s1974_s13   ;;  %p1648_p0 = scmp.ge.s32.totalorder %s1974_s13, 1  ;;  %s1974_s13 = sphi %s2049_s13, %s21_s13  }
   0x2   : > { %p347_p1 = scmp.lt.s32.totalorder %s1974_s13, 3 }
   0x4   : > { %p348_p2 = pnand %p1648_p0, %p347_p1 }
   0x5   : > { %p399_p3 = scmp.lt.s32.totalorder (!%p348_p2), %s2055_s14, 1  ;;  %p1658_p4 = scmp.ne.s32.totalorder (!%p348_p2), %s2055_s14, 0 }
   0x6   : > { %351 = sbr.rel (%p348_p2) target bundleno = 3235 (0xca3), region = 60 }
   0xb   : > { %v2063_v0 = vld [vmem:[%s2354_s3] sm:$0xf]  ;;  %s400_s17 = scalar_select %p399_p3, %s2055_s14, 1 }
   0xd   : > { %s1799_s18 = sshll.u32 %s400_s17, 4  ;;  %s1802_s19 = sshll.u32 %s400_s17, 6 }
   0xe   : > { %s2069_s22 = scalar_lea.vmem %s2356_s5, %s1799_s18  ;;  %s2074_s25 = scalar_lea.vmem %s2357_s6, %s1799_s18 }
   0xf   : > { %s2079_s28 = scalar_lea.vmem %s2358_s7, %s1799_s18  ;;  %s2084_s11 = scalar_lea.vmem %s2359_s8, %s1802_s19 }
  0x10   : > { %s1657_s12 = sshll.u32 %s400_s17, 3  ;;  %428 = sbr.rel (%p1658_p4) target bundleno = 460 (0x1cc), region = 64 }
  0x11   : > { %s2089_s20 = scalar_lea.vmem %s2360_s9, %s1657_s12 }
  0x15   : > { %v1810_v1 = vld [vmem:[%s2352_s1 + $0x38] sm:$0xff]  ;;  %v1809_v3 = vld [vmem:[%s2352_s1 + $0x30] sm:$0xff]  ;;  %v1808_v5 = vld [vmem:[%s2352_s1 + $0x28] sm:$0xff]  ;;  %vm533_vm0 = vcmask 523264   ;;  %vm565_vm1 = vcmask 261120   ;;  %vm569_vm2 = vcmask 254976  }
  0x16   : > { %v1814_v2 = vld [vmem:[%s2352_s1 + $0x58] sm:$0xff]  ;;  %537 = vmatpush.bf16.msra.mxu0 %v1810_v1  ;;  %v1813_v4 = vld [vmem:[%s2352_s1 + $0x50] sm:$0xff]  ;;  %v1812_v6 = vld [vmem:[%s2352_s1 + $0x48] sm:$0xff]  ;;  %v1976_v31 = vmov 32.0   ;;  %v618_v62 = vperm.slane %v2063_v0, 0 }
  0x17   : > { %555 = vmatpush.bf16.msra.mxu1 %v1814_v2  ;;  %v1807_v7 = vld [vmem:[%s2352_s1 + $0x20] sm:$0xff]  ;;  %v430_v9 = vld [vmem:[%s2351_s0 + $0x8] sm:$0xff]  ;;  %v432_v10 = vld [vmem:[%s2351_s0 + $0x18] sm:$0x3]  ;;  %1863 = vrcp.f32 %v1976_v31  ;;  %v621_v2 = vperm.slane %v2063_v0, 1 }
  0x18   : > { %v1811_v8 = vld [vmem:[%s2352_s1 + $0x40] sm:$0xff]  ;;  %v1806_v11 = vld [vmem:[%s2352_s1 + $0x18] sm:$0xff]  ;;  %v434_v12 = vpack.c.bf16 %v432_v10, %v430_v9  ;;  %v1805_v13 = vld [vmem:[%s2352_s1 + $0x10] sm:$0xff] }
  0x19   : > { %v1804_v14 = vld [vmem:[%s2352_s1 + $0x8] sm:$0xff]  ;;  %v1803_v15 = vld [vmem:[%s2352_s1] sm:$0xff]  ;;  %v431_v17 = vld [vmem:[%s2351_s0 + $0x10] sm:$0x3] }
  0x1a   : > { %538 = vmatpush.bf16.msra.mxu0 %v1809_v3  ;;  %v429_v16 = vld [vmem:[%s2351_s0] sm:$0xff]  ;;  %v460_v25 = vld [vmem:[%s2353_s2 + $0x8] sm:$0x3] }
  0x1b   : > { %556 = vmatpush.bf16.msra.mxu1 %v1813_v4  ;;  %v433_v18 = vpack.c.bf16 %v431_v17, %v429_v16  ;;  %v459_v19 = vld [vmem:[%s2353_s2] sm:$0xff] }
  0x1d   : > { %v1864_v32 = vpop.eup %1863 }
  0x1e   : > { %539 = vmatpush.bf16.msra.mxu0 %v1808_v5  ;;  %v574_v33 = vmul.f32 32.0, %v1864_v32  ;;  %vm578_vm3 = vweird.f32 %v1864_v32 }
  0x1f   : > { %557 = vmatpush.bf16.msra.mxu1 %v1812_v6 }
  0x20   : > { %v575_v34 = vsub.f32 1.0, %v574_v33 }
  0x22   : > { %540 = vmatpush.bf16.msra.mxu0 %v1807_v7  ;;  %v576_v35 = vmul.f32 %v1864_v32, %v575_v34 }
  0x23   : > { %558 = vmatpush.bf16.msra.mxu1 %v1811_v8 }
  0x24   : > { %v577_v36 = vadd.f32 %v1864_v32, %v576_v35 }
  0x26   : > { %541 = vmatpush.bf16.msra.mxu0 %v1806_v11  ;;  %1707 = vmatmul.msk.bf16.vlgmr.msra.gmra.mxu1 %vm533_vm0, %v434_v12  ;;  %v579_v37 = vsel %vm578_vm3, %v1864_v32, %v577_v36 }
  0x2a   : > { %542 = vmatpush.bf16.msra.mxu0 %v1805_v13 }
  0x2e   : > { %543 = vmatpush.bf16.msra.mxu0 %v1804_v14 }
  0x32   : > { %544 = vmatpush.bf16.msra.mxu0 %v1803_v15 }
  0x35   : > { %545 = vmatmul.bf16.vlgmr.msra.gmra.mxu0 %v433_v18 }
  0xa3   : > { %v560_v20 = vpop.f32.mrf.mxu1 }
  0xab   : > { %v562_v28 = vpop.f32.mrf.mxu1 }
  0xb2   : > { %v546_v21 = vpop.f32.mrf.mxu0 }
  0xb3   : > { %v547_v22 = vadd.f32 %v546_v21, %v459_v19 }
  0xb5   : > { %v561_v23 = vadd.f32 %v560_v20, %v547_v22 }
  0xb7   : > { %v566_v24 = vsel %vm565_vm1, %v561_v23, 0.0 }
  0xb8   : > { %567 = vadd.xlane.f32.xlu0 %v566_v24 }
  0xba   : > { %v548_v26 = vpop.f32.mrf.mxu0 }
  0xbb   : > { %v549_v27 = vadd.f32 %v548_v26, %v460_v25 }
  0xbd   : > { %v563_v29 = vadd.f32 %v562_v28, %v549_v27 }
  0xbf   : > { %v570_v30 = vsel %vm569_vm2, %v563_v29, 0.0 }
  0xc0   : > { %571 = vadd.xlane.f32.xlu0 %v570_v30 }
 0x12b   : > { %v568_v38 = vpop.xlane.xlu0 %567 }
 0x12c   : > { %v580_v39 = vmul.f32 %v579_v37, %v568_v38 }
 0x12e   : > { %v582_v40 = vsub.f32 %v561_v23, %v580_v39 }
 0x130   : > { %v584_v41 = vmul.f32 %v582_v40, %v582_v40 }
 0x132   : > { %v586_v42 = vsel %vm565_vm1, %v584_v41, 0.0 }
 0x133   : > { %587 = vadd.xlane.f32.xlu1 %v586_v42  ;;  %v572_v43 = vpop.xlane.xlu0 %571 }
 0x134   : > { %v581_v44 = vmul.f32 %v579_v37, %v572_v43 }
 0x136   : > { %v583_v45 = vsub.f32 %v563_v29, %v581_v44 }
 0x138   : > { %v585_v46 = vmul.f32 %v583_v45, %v583_v45 }
 0x13a   : > { %v589_v47 = vsel %vm569_vm2, %v585_v46, 0.0 }
 0x13b   : > { %590 = vadd.xlane.f32.xlu1 %v589_v47 }
 0x1a6   : > { %v588_v48 = vpop.xlane.xlu1 %587 }
 0x1a7   : > { %v592_v49 = vmul.f32 %v588_v48, %v579_v37 }
 0x1a9   : > { %v594_v50 = vadd.f32 1e-05, %v592_v49 }
 0x1ab   : > { %1865 = vrsqrt.f32 %v594_v50  ;;  %vm602_vm5 = vweird.f32 %v594_v50 }
 0x1ae   : > { %v591_v51 = vpop.xlane.xlu1 %590 }
 0x1af   : > { %v593_v52 = vmul.f32 %v591_v51, %v579_v37 }
 0x1b1   : > { %v1866_v53 = vpop.eup %1865  ;;  %v595_v54 = vadd.f32 1e-05, %v593_v52 }
 0x1b2   : > { %v597_v55 = vmul.f32 %v1866_v53, %v594_v50  ;;  %vm603_vm4 = vweird.f32 %v1866_v53 }
 0x1b3   : > { %1867 = vrsqrt.f32 %v595_v54  ;;  %vm604_vm6 = vmor %vm602_vm5, %vm603_vm4  ;;  %vm612_vm8 = vweird.f32 %v595_v54 }
 0x1b4   : > { %v598_v56 = vmul.f32 %v1866_v53, %v597_v55 }
 0x1b6   : > { %v599_v57 = vmul.f32 0.5, %v598_v56 }
 0x1b8   : > { %v600_v58 = vsub.f32 1.5, %v599_v57 }
 0x1b9   : > { %v1868_v59 = vpop.eup %1867 }
 0x1ba   : > { %v601_v60 = vmul.f32 %v1866_v53, %v600_v58  ;;  %v607_v61 = vmul.f32 %v1868_v59, %v595_v54  ;;  %vm613_vm7 = vweird.f32 %v1868_v59 }
 0x1bb   : > { %vm614_vm9 = vmor %vm612_vm8, %vm613_vm7 }
 0x1bc   : > { %v605_v63 = vsel %vm604_vm6, %v1866_v53, %v601_v60  ;;  %v608_v1 = vmul.f32 %v1868_v59, %v607_v61 }
 0x1bd   : > { %v616_v3 = vmul.f32 %v605_v63, %v582_v40 }
 0x1be   : > { %v609_v4 = vmul.f32 0.5, %v608_v1 }
 0x1bf   : > { %v619_v5 = vmul.f32 %v618_v62, %v616_v3 }
 0x1c0   : > { %v610_v6 = vsub.f32 1.5, %v609_v4 }
 0x1c1   : > { %v622_v7 = vadd.f32 %v621_v2, %v619_v5 }
 0x1c2   : > { %v611_v8 = vmul.f32 %v1868_v59, %v610_v6 }
 0x1c3   : > { %624 = vst.msk [vmem:[#allocation2] sm:$0xff] %vm565_vm1, %v622_v7 }
 0x1c4   : > { %v615_v9 = vsel %vm614_vm9, %v1868_v59, %v611_v8 }
 0x1c5   : > { %v617_v10 = vmul.f32 %v615_v9, %v583_v45 }
 0x1c7   : > { %v620_v11 = vmul.f32 %v618_v62, %v617_v10 }
 0x1c9   : > { %v623_v12 = vadd.f32 %v621_v2, %v620_v11 }
 0x1cb   : > { %625 = vst.msk [vmem:[#allocation2 + $0x8] sm:$0x3] %vm569_vm2, %v623_v12 }
 0x1cc PF: > { %v2154_v13 = vld [vmem:[#allocation2] sm:$0xff]  ;;  %vm629_vm10 = vcmask 261120   ;;  %vm633_vm11 = vcmask 254976   ;;  %v1977_v17 = vmov 32.0   ;;  %v1816_v34 = vld [vmem:[%s2069_s22 + $0x8] sm:$0xff]  ;;  %s1980_s12 = smov 96  }
 0x1cd   : > { %v630_v14 = vsel %vm629_vm10, %v2154_v13, 0.0  ;;  %1884 = vrcp.f32 %v1977_v17  ;;  %715 = vmatpush.bf16.msra.mxu0 %v1816_v34  ;;  %v1815_v36 = vld [vmem:[%s2069_s22] sm:$0xff]  ;;  %s1978_s22 = smov 88   ;;  %s1981_s15 = smov 120   ;;  %vm730_vm3 = vcmask 64512   ;;  %vm769_vm4 = vcmask 1041408  }
 0x1ce   : > { %631 = vadd.xlane.f32.xlu0 %v630_v14  ;;  %v2175_v53 = vld [vmem:[%s2089_s20] sm:$0xff]  ;;  %s1979_s20 = smov 64   ;;  %s1982_s16 = smov 104   ;;  %vm770_vm5 = vcmask 1042432   ;;  %vm750_vm6 = vcmask 36864   ;;  %vm765_vm7 = vcmask 39936  }
 0x1cf   : > { %v682_v56 = vperm.slane %v2175_v53, 0  ;;  %v685_v61 = vperm.slane %v2175_v53, 1  ;;  %v693_v3 = vperm.slane %v2175_v53, 2  ;;  %s1983_s21 = smov 112   ;;  %s1985_s23 = smov 80   ;;  %vm970_vm8 = vcmask 130048  }
 0x1d0   : > { %s1986_s18 = smov 72   ;;  %s1987_s24 = smov 48   ;;  %vm972_vm9 = vcmask 195584  }
 0x1d1   : > { %716 = vmatpush.bf16.msra.mxu0 %v1815_v36  ;;  %s1988_s19 = smov 56   ;;  %s1989_s26 = smov 40  }
 0x1d2   : > { %v2158_v15 = vld [vmem:[#allocation2 + $0x8] sm:$0x3]  ;;  %s1990_s17 = smov 8   ;;  %s1991_s27 = smov 24  }
 0x1d3   : > { %v634_v16 = vsel %vm633_vm11, %v2158_v15, 0.0  ;;  %v1885_v18 = vpop.eup %1884  ;;  %s1992_s29 = smov 16   ;;  %p1785_p5 = scmp.ne.s32.totalorder %s2055_s14, 1 }
 0x1d4   : > { %v638_v19 = vmul.f32 32.0, %v1885_v18  ;;  %vm642_vm12 = vweird.f32 %v1885_v18 }
 0x1d6   : > { %635 = vadd.xlane.f32.xlu0 %v634_v16  ;;  %v639_v20 = vsub.f32 1.0, %v638_v19 }
 0x1d8   : > { %v640_v21 = vmul.f32 %v1885_v18, %v639_v20 }
 0x1da   : > { %v641_v22 = vadd.f32 %v1885_v18, %v640_v21 }
 0x1dc   : > { %v2162_v23 = vsel %vm642_vm12, %v1885_v18, %v641_v22  ;;  %vm1225_vm12 = vcmask 1044480  }
 0x241   : > { %v632_v24 = vpop.xlane.xlu0 %631 }
 0x242   : > { %v644_v25 = vmul.f32 %v2162_v23, %v632_v24  ;;  %v1984_v24 = vmov 65535  }
 0x244   : > { %v646_v26 = vsub.f32 %v2154_v13, %v644_v25  ;;  %v771_v25 = vsel %vm769_vm4, 4294967295, %v1984_v24 }
 0x246   : > { %v648_v27 = vmul.f32 %v646_v26, %v646_v26 }
 0x248   : > { %v650_v28 = vsel %vm629_vm10, %v648_v27, 0.0 }
 0x249   : > { %651 = vadd.xlane.f32.xlu1 %v650_v28  ;;  %v636_v29 = vpop.xlane.xlu0 %635 }
 0x24a   : > { %v645_v30 = vmul.f32 %v2162_v23, %v636_v29 }
 0x24c   : > { %v647_v31 = vsub.f32 %v2158_v15, %v645_v30 }
 0x24e   : > { %v649_v32 = vmul.f32 %v647_v31, %v647_v31 }
 0x250   : > { %v653_v33 = vsel %vm633_vm11, %v649_v32, 0.0 }
 0x251   : > { %654 = vadd.xlane.f32.xlu1 %v653_v33 }
 0x2bc   : > { %v652_v35 = vpop.xlane.xlu1 %651 }
 0x2bd   : > { %v656_v37 = vmul.f32 %v652_v35, %v2162_v23 }
 0x2bf   : > { %v658_v38 = vadd.f32 1e-05, %v656_v37 }
 0x2c1   : > { %1886 = vrsqrt.f32 %v658_v38  ;;  %vm666_vm14 = vweird.f32 %v658_v38 }
 0x2c4   : > { %v655_v39 = vpop.xlane.xlu1 %654 }
 0x2c5   : > { %v657_v40 = vmul.f32 %v655_v39, %v2162_v23 }
 0x2c7   : > { %v1887_v41 = vpop.eup %1886  ;;  %v659_v42 = vadd.f32 1e-05, %v657_v40 }
 0x2c8   : > { %v661_v43 = vmul.f32 %v1887_v41, %v658_v38  ;;  %vm667_vm13 = vweird.f32 %v1887_v41 }
 0x2c9   : > { %1888 = vrsqrt.f32 %v659_v42  ;;  %vm668_vm15 = vmor %vm666_vm14, %vm667_vm13  ;;  %vm676_vm1 = vweird.f32 %v659_v42 }
 0x2ca   : > { %v662_v44 = vmul.f32 %v1887_v41, %v661_v43 }
 0x2cc   : > { %v663_v45 = vmul.f32 0.5, %v662_v44 }
 0x2ce   : > { %v664_v46 = vsub.f32 1.5, %v663_v45 }
 0x2cf   : > { %v1889_v47 = vpop.eup %1888 }
 0x2d0   : > { %v665_v48 = vmul.f32 %v1887_v41, %v664_v46  ;;  %v671_v49 = vmul.f32 %v1889_v47, %v659_v42  ;;  %vm677_vm0 = vweird.f32 %v1889_v47 }
 0x2d1   : > { %vm678_vm2 = vmor %vm676_vm1, %vm677_vm0 }
 0x2d2   : > { %v672_v50 = vmul.f32 %v1889_v47, %v671_v49  ;;  %v669_v51 = vsel %vm668_vm15, %v1887_v41, %v665_v48 }
 0x2d3   : > { %v680_v55 = vmul.f32 %v669_v51, %v646_v26  ;;  %v2199_v26 = vsel %vm770_vm5, %v771_v25, 0 }
 0x2d4   : > { %v673_v52 = vmul.f32 0.5, %v672_v50 }
 0x2d5   : > { %v683_v60 = vmul.f32 %v682_v56, %v680_v55 }
 0x2d6   : > { %v674_v54 = vsub.f32 1.5, %v673_v52 }
 0x2d7   : > { %v686_v63 = vadd.f32 %v685_v61, %v683_v60 }
 0x2d8   : > { %v675_v57 = vmul.f32 %v1889_v47, %v674_v54 }
 0x2da   : > { %v679_v58 = vsel %vm678_vm2, %v1889_v47, %v675_v57 }
 0x2db   : > { %v681_v59 = vmul.f32 %v679_v58, %v647_v31 }
 0x2dd   : > { %v684_v62 = vmul.f32 %v682_v56, %v681_v59 }
 0x2df   : > { %v687_v1 = vadd.f32 %v685_v61, %v684_v62 }
 0x2e1   : > { %v688_v2 = vpack.c.bf16 %v687_v1, %v686_v63 }
 0x2e3   : > { %1716 = vmatmul.msk.bf16.vlgmr.msra.gmra.mxu0 %vm629_vm10, %v688_v2 }
 0x360   : > { %v718_v4 = vpop.f32.mrf.mxu0 }
 0x361   : > { %v719_v5 = vadd.f32 %v718_v4, %v693_v3 }
 0x363   : > { %v723_v6 = vpack.c.bf16 %v719_v5, %v719_v5 }
 0x365   : > { %v726_v7 = vunpack.c.l.b16 %v723_v6 }
 0x367   : > { %v2181_v8 = vpack.c.b16 %v726_v7, %v726_v7 }
 0x368   : > { %v720_v9 = vpop.f32.mrf.mxu0 }
 0x369   : > { %791 = vrot.lane.b32.xlu0 %v2181_v8, %s1978_s22  ;;  %763 = vrot.lane.b32.xlu1 %v2181_v8, %s1979_s20  ;;  %v721_v10 = vadd.f32 %v720_v9, %v693_v3 }
 0x36a   : > { %728 = vrot.lane.b32.xlu2 %v2181_v8, %s1980_s12 }
 0x36b   : > { %v724_v11 = vpack.c.bf16 %v721_v10, %v721_v10 }
 0x36d   : > { %v975_v12 = vunpack.c.l.b16 %v724_v11 }
 0x36f   : > { %v976_v14 = vpack.c.b16 %v975_v12, %v726_v7 }
 0x371   : > { %789 = vrot.lane.b32.xlu1 %v2181_v8, %s1981_s15  ;;  %v978_v16 = vshrl.u32 %v976_v14, 16  ;;  %v981_v17 = vshll.u32 %v976_v14, 16 }
 0x373   : > { %v980_v18 = vrot.slane %v978_v16, 2  ;;  %v983_v19 = vrot.slane %v981_v17, 3 }
 0x375   : > { %v2193_v20 = vor.u32 %v983_v19, %v980_v18 }
 0x379   : > { %901 = vrot.lane.b32.xlu1 %v2181_v8, %s1982_s16 }
 0x381   : > { %845 = vrot.lane.b32.xlu1 %v2181_v8, %s1983_s21 }
 0x389   : > { %985 = vrot.lane.b32.xlu1 %v2193_v20, %s1980_s12 }
 0x391   : > { %1151 = vrot.lane.b32.xlu1 %v2193_v20, %s1982_s16 }
 0x3c4   : > { %v729_v21 = vpop.permute.xlu2 %728 }
 0x3c5   : > { %v735_v22 = vsel %vm730_vm3, %v729_v21, 0 }
 0x3c6   : > { %744 = vmatpush.bf16.xpose.msra.mxu1 %v735_v22 }
 0x3cd   : > { %1717 = vmatmul.msk.bf16.vlgmr.msra.gmra.mxu1 %vm730_vm3, %v723_v6 }
 0x3db   : > { %v792_v27 = vpop.permute.xlu0 %791  ;;  %v764_v28 = vpop.permute.xlu1 %763 }
 0x3dc   : > { %v774_v29 = vand.u32 %v2199_v26, %v764_v28  ;;  %v797_v30 = vsel %vm730_vm3, %v792_v27, 0 }
 0x3de   : > { %783 = vmatpush.bf16.msra.mxu2 %v774_v29 }
 0x3e2   : > { %806 = vmatpush.bf16.xpose.msrb.mxu2 %v797_v30 }
 0x3e3   : > { %v790_v34 = vpop.permute.xlu1 %789 }
 0x3eb   : > { %v902_v35 = vpop.permute.xlu1 %901 }
 0x3f3   : > { %v846_v36 = vpop.permute.xlu1 %845 }
 0x3fb   : > { %v986_v40 = vpop.permute.xlu1 %985 }
 0x3fc   : > { %v991_v43 = vsel %vm730_vm3, %v986_v40, 0 }
 0x403   : > { %v1152_v3 = vpop.permute.xlu1 %1151 }
 0x44a   : > { %v746_v31 = vpop.f32.mrf.mxu1 }
 0x44b   : > { %v751_v32 = vsel %vm750_vm6, %v746_v31, -inf }
 0x44c   : > { %752 = vmax.xlane.f32.xlu2 %v751_v32 }
 0x452   : > { %v748_v33 = vpop.f32.mrf.mxu1 }
 0x464   : > { %847 = vrot.lane.b32.xlu2 %v2181_v8, %s1985_s23 }
 0x46c   : > { %1097 = vrot.lane.b32.xlu2 %v2193_v20, %s1985_s23 }
 0x4bf   : > { %v753_v37 = vpop.xlane.xlu2 %752 }
 0x4c0   : > { %v754_v38 = vsub.f32 %v746_v31, %v753_v37 }
 0x4c2   : > { %v755_v39 = vmul.f32 1.442695, %v754_v38 }
 0x4c4   : > { %1890 = vpow2.f32 %v755_v39 }
 0x4c7   : > { %v848_v41 = vpop.permute.xlu2 %847 }
 0x4c8   : > { %v853_v42 = vsel %vm730_vm3, %v848_v41, 0 }
 0x4c9   : > { %862 = vmatpush.bf16.xpose.msrb.mxu0 %v853_v42 }
 0x4ca   : > { %v1891_v44 = vpop.eup %1890 }
 0x4cb   : > { %v757_v45 = vsel %vm750_vm6, %v1891_v44, 0.0 }
 0x4cc   : > { %758 = vadd.xlane.f32.xlu0 %v757_v45 }
 0x4cf   : > { %v1098_v46 = vpop.permute.xlu2 %1097 }
 0x4d0   : > { %v1103_v47 = vsel %vm730_vm3, %v1098_v46, 0  ;;  %1721 = vmatmul.msk.bf16.vlgmr.msrb.gmra.mxu0 %vm730_vm3, %v846_v36 }
 0x4d1   : > { %1000 = vmatpush.bf16.xpose.msra.mxu0 %v991_v43 }
 0x4d9   : > { %1112 = vmatpush.bf16.xpose.msrb.mxu0 %v1103_v47 }
 0x4e0   : > { %903 = vrot.lane.b32.xlu0 %v2181_v8, %s1986_s18  ;;  %1725 = vmatmul.msk.bf16.vlgmr.msra.gmra.mxu0 %vm730_vm3, %v2193_v20 }
 0x4e8   : > { %1041 = vrot.lane.b32.xlu0 %v2193_v20, %s1978_s22 }
 0x4f0   : > { %1039 = vrot.lane.b32.xlu0 %v2193_v20, %s1981_s15 }
 0x4f8   : > { %1153 = vrot.lane.b32.xlu0 %v2193_v20, %s1986_s18 }
 0x500   : > { %1095 = vrot.lane.b32.xlu0 %v2193_v20, %s1983_s21 }
 0x53f   : > { %v759_v48 = vpop.xlane.xlu0 %758 }
 0x540   : > { %1892 = vrcp.f32 %v759_v48 }
 0x546   : > { %v1893_v49 = vpop.eup %1892 }
 0x547   : > { %v761_v50 = vmul.f32 %v1893_v49, %v1891_v44 }
 0x549   : > { %v762_v51 = vpack.c.bf16 %v761_v50, %v761_v50 }
 0x54b   : > { %1718 = vmatmul.msk.bf16.vlgmr.msra.gmra.mxu2 %vm765_vm7, %v762_v51 }
 0x54d   : > { %v864_v52 = vpop.f32.mrf.mxu0 }
 0x54e   : > { %v868_v54 = vsel %vm750_vm6, %v864_v52, -inf }
 0x54f   : > { %869 = vmax.xlane.f32.xlu0 %v868_v54 }
 0x552   : > { %v904_v55 = vpop.permute.xlu0 %903 }
 0x553   : > { %v909_v56 = vsel %vm730_vm3, %v904_v55, 0 }
 0x554   : > { %918 = vmatpush.bf16.xpose.msra.mxu3 %v909_v56 }
 0x555   : > { %v866_v57 = vpop.f32.mrf.mxu0 }
 0x55a   : > { %v1042_v58 = vpop.permute.xlu0 %1041 }
 0x55b   : > { %1719 = vmatmul.msk.bf16.vlgmr.msrb.gmra.mxu2 %vm730_vm3, %v790_v34  ;;  %1723 = vmatmul.msk.bf16.vlgmr.msra.gmra.mxu3 %vm730_vm3, %v902_v35  ;;  %v1047_v59 = vsel %vm730_vm3, %v1042_v58, 0 }
 0x55c   : > { %1056 = vmatpush.bf16.xpose.msrb.mxu3 %v1047_v59 }
 0x55d   : > { %v2227_v60 = vpop.f32.mrf.mxu0 }
 0x55e   : > { %v1006_v16 = vsel %vm750_vm6, %v2227_v60, -inf }
 0x562   : > { %v1040_v61 = vpop.permute.xlu0 %1039 }
 0x565   : > { %v1004_v62 = vpop.f32.mrf.mxu0 }
 0x56a   : > { %v1154_v63 = vpop.permute.xlu0 %1153 }
 0x56b   : > { %v1159_v1 = vsel %vm730_vm3, %v1154_v63, 0  ;;  %1727 = vmatmul.msk.bf16.vlgmr.msrb.gmra.mxu3 %vm730_vm3, %v1040_v61 }
 0x56c   : > { %1168 = vmatpush.bf16.xpose.msra.mxu3 %v1159_v1 }
 0x572   : > { %v1096_v2 = vpop.permute.xlu0 %1095 }
 0x573   : > { %1729 = vmatmul.msk.bf16.vlgmr.msrb.gmra.mxu0 %vm730_vm3, %v1096_v2 }
 0x57b   : > { %1731 = vmatmul.msk.bf16.vlgmr.msra.gmra.mxu3 %vm730_vm3, %v1152_v3 }
 0x5c2   : > { %v870_v11 = vpop.xlane.xlu0 %869 }
 0x5c3   : > { %v871_v17 = vsub.f32 %v864_v52, %v870_v11 }
 0x5c5   : > { %v872_v18 = vmul.f32 1.442695, %v871_v17 }
 0x5c7   : > { %1894 = vpow2.f32 %v872_v18 }
 0x5cd   : > { %v1895_v25 = vpop.eup %1894 }
 0x5ce   : > { %v2233_v4 = vpop.f32.mrf.mxu2  ;;  %v874_v29 = vsel %vm750_vm6, %v1895_v25, 0.0 }
 0x5d6   : > { %v787_v5 = vpop.f32.mrf.mxu2 }
 0x5de   : > { %v808_v6 = vpop.f32.mrf.mxu2  ;;  %v920_v7 = vpop.f32.mrf.mxu3 }
 0x5df   : > { %v812_v9 = vsel %vm750_vm6, %v808_v6, -inf  ;;  %v924_v10 = vsel %vm750_vm6, %v920_v7, -inf }
 0x5e0   : > { %813 = vmax.xlane.f32.xlu1 %v812_v9  ;;  %925 = vmax.xlane.f32.xlu2 %v924_v10 }
 0x5e6   : > { %v810_v12 = vpop.f32.mrf.mxu2  ;;  %v922_v14 = vpop.f32.mrf.mxu3 }
 0x5e8   : > { %1007 = vmax.xlane.f32.xlu1 %v1006_v16 }
 0x5ee   : > { %v1058_v19 = vpop.f32.mrf.mxu3 }
 0x5ef   : > { %v1062_v21 = vsel %vm750_vm6, %v1058_v19, -inf }
 0x5f0   : > { %1063 = vmax.xlane.f32.xlu2 %v1062_v21  ;;  %v1114_v22 = vpop.f32.mrf.mxu0 }
 0x5f1   : > { %v1118_v24 = vsel %vm750_vm6, %v1114_v22, -inf }
 0x5f2   : > { %1119 = vmax.xlane.f32.xlu1 %v1118_v24 }
 0x5f6   : > { %v1060_v27 = vpop.f32.mrf.mxu3 }
 0x5f8   : > { %v1116_v28 = vpop.f32.mrf.mxu0 }
 0x5fa   : > { %875 = vadd.xlane.f32.xlu1 %v874_v29 }
 0x5fe   : > { %v1170_v30 = vpop.f32.mrf.mxu3 }
 0x5ff   : > { %v1174_v31 = vsel %vm750_vm6, %v1170_v30, -inf }
 0x600   : > { %1175 = vmax.xlane.f32.xlu0 %v1174_v31 }
 0x606   : > { %v1172_v32 = vpop.f32.mrf.mxu3 }
 0x613   : > { %880 = vrot.lane.b32.xlu1 %v2181_v8, %s1987_s24 }
 0x614   : > { %824 = vrot.lane.b32.xlu0 %v2181_v8, %s1988_s19 }
 0x61b   : > { %1074 = vrot.lane.b32.xlu1 %v2193_v20, %s1988_s19 }
 0x623   : > { %1018 = vrot.lane.b32.xlu1 %v2193_v20, %s1979_s20 }
 0x653   : > { %v814_v33 = vpop.xlane.xlu1 %813  ;;  %v926_v34 = vpop.xlane.xlu2 %925 }
 0x654   : > { %v927_v35 = vsub.f32 %v920_v7, %v926_v34  ;;  %v815_v37 = vsub.f32 %v808_v6, %v814_v33 }
 0x656   : > { %v928_v36 = vmul.f32 1.442695, %v927_v35  ;;  %v816_v38 = vmul.f32 1.442695, %v815_v37 }
 0x658   : > { %1896 = vpow2.f32 %v928_v36 }
 0x659   : > { %1898 = vpow2.f32 %v816_v38 }
 0x65b   : > { %v1008_v39 = vpop.xlane.xlu1 %1007 }
 0x65e   : > { %v2249_v40 = vpop.eup %1896 }
 0x65f   : > { %v930_v41 = vsel %vm750_vm6, %v2249_v40, 0.0  ;;  %v1899_v44 = vpop.eup %1898 }
 0x660   : > { %931 = vadd.xlane.f32.xlu2 %v930_v41  ;;  %v818_v48 = vsel %vm750_vm6, %v1899_v44, 0.0 }
 0x663   : > { %v1064_v42 = vpop.xlane.xlu2 %1063 }
 0x664   : > { %v1065_v43 = vsub.f32 %v1058_v19, %v1064_v42 }
 0x665   : > { %v1120_v45 = vpop.xlane.xlu1 %1119 }
 0x666   : > { %v1066_v46 = vmul.f32 1.442695, %v1065_v43  ;;  %v1121_v47 = vsub.f32 %v1114_v22, %v1120_v45 }
 0x668   : > { %1900 = vpow2.f32 %v1066_v46  ;;  %819 = vadd.xlane.f32.xlu2 %v818_v48  ;;  %v1122_v49 = vmul.f32 1.442695, %v1121_v47 }
 0x66a   : > { %1902 = vpow2.f32 %v1122_v49 }
 0x66d   : > { %v876_v58 = vpop.xlane.xlu1 %875 }
 0x66e   : > { %v2254_v50 = vpop.eup %1900 }
 0x66f   : > { %v1068_v51 = vsel %vm750_vm6, %v2254_v50, 0.0 }
 0x670   : > { %1069 = vadd.xlane.f32.xlu0 %v1068_v51  ;;  %v2258_v54 = vpop.eup %1902 }
 0x671   : > { %v1124_v57 = vsel %vm750_vm6, %v2258_v54, 0.0 }
 0x673   : > { %v1176_v52 = vpop.xlane.xlu0 %1175 }
 0x674   : > { %v1177_v55 = vsub.f32 %v1170_v30, %v1176_v52 }
 0x676   : > { %v1178_v56 = vmul.f32 1.442695, %v1177_v55 }
 0x678   : > { %1904 = vpow2.f32 %v1178_v56  ;;  %1125 = vadd.xlane.f32.xlu0 %v1124_v57 }
 0x679   : > { %1906 = vrcp.f32 %v876_v58 }
 0x67e   : > { %v1905_v59 = vpop.eup %1904 }
 0x67f   : > { %v1180_v61 = vsel %vm750_vm6, %v1905_v59, 0.0  ;;  %v1907_v62 = vpop.eup %1906 }
 0x680   : > { %1181 = vadd.xlane.f32.xlu1 %v1180_v61  ;;  %936 = vrot.lane.b32.xlu2 %v2181_v8, %s1989_s26  ;;  %v878_v63 = vmul.f32 %v1907_v62, %v1895_v25  ;;  %v1009_v8 = vsub.f32 %v2227_v60, %v1008_v39 }
 0x682   : > { %v879_v6 = vpack.c.bf16 %v878_v63, %v878_v63  ;;  %v1010_v11 = vmul.f32 1.442695, %v1009_v8 }
 0x684   : > { %1908 = vpow2.f32 %v1010_v11 }
 0x685   : > { %v881_v1 = vpop.permute.xlu1 %880 }
 0x686   : > { %v886_v2 = vand.u32 %v881_v1, %v2199_v26  ;;  %v825_v3 = vpop.permute.xlu0 %824 }
 0x687   : > { %v830_v5 = vand.u32 %v825_v3, %v2199_v26  ;;  %v1818_v3 = vld [vmem:[%s2074_s25 + $0x8] sm:$0xff] }
 0x688   : > { %895 = vmatpush.bf16.msrb.mxu1 %v886_v2  ;;  %1253 = vmatpush.bf16.msra.mxu0 %v1818_v3 }
 0x689   : > { %839 = vmatpush.bf16.msra.mxu2 %v830_v5  ;;  %v1817_v5 = vld [vmem:[%s2074_s25] sm:$0xff] }
 0x68a   : > { %v1909_v12 = vpop.eup %1908 }
 0x68b   : > { %1722 = vmatmul.msk.bf16.vlgmr.msrb.gmra.mxu1 %vm765_vm7, %v879_v6  ;;  %v1012_v14 = vsel %vm750_vm6, %v1909_v12, 0.0 }
 0x68c   : > { %1186 = vrot.lane.b32.xlu0 %v2193_v20, %s1989_s26  ;;  %1254 = vmatpush.bf16.msra.mxu0 %v1817_v5 }
 0x68d   : > { %v1075_v7 = vpop.permute.xlu1 %1074 }
 0x68e   : > { %v1080_v60 = vand.u32 %v1075_v7, %v2199_v26 }
 0x695   : > { %v1019_v9 = vpop.permute.xlu1 %1018 }
 0x696   : > { %v1024_v10 = vand.u32 %v1019_v9, %v2199_v26 }
 0x698   : > { %1033 = vmatpush.bf16.msra.mxu1 %v1024_v10 }
 0x6a9   : > { %1013 = vadd.xlane.f32.xlu2 %v1012_v14 }
 0x6c1   : > { %1130 = vrot.lane.b32.xlu2 %v2193_v20, %s1987_s24 }
 0x6d3   : > { %v932_v16 = vpop.xlane.xlu2 %931 }
 0x6db   : > { %v820_v17 = vpop.xlane.xlu2 %819 }
 0x6dc   : > { %1910 = vrcp.f32 %v820_v17 }
 0x6dd   : > { %1912 = vrcp.f32 %v932_v16 }
 0x6e2   : > { %v1911_v18 = vpop.eup %1910 }
 0x6e3   : > { %v822_v19 = vmul.f32 %v1911_v18, %v1899_v44  ;;  %v937_v21 = vpop.permute.xlu2 %936  ;;  %v1070_v25 = vpop.xlane.xlu0 %1069 }
 0x6e4   : > { %v942_v22 = vand.u32 %v937_v21, %v2199_v26  ;;  %v1913_v27 = vpop.eup %1912  ;;  %1914 = vrcp.f32 %v1070_v25 }
 0x6e5   : > { %v823_v24 = vpack.c.bf16 %v822_v19, %v822_v19  ;;  %v934_v20 = vmul.f32 %v1913_v27, %v2249_v40 }
 0x6e6   : > { %951 = vmatpush.bf16.msrb.mxu2 %v942_v22 }
 0x6e7   : > { %1720 = vmatmul.msk.bf16.vlgmr.msra.gmra.mxu2 %vm765_vm7, %v823_v24  ;;  %v935_v28 = vpack.c.bf16 %v934_v20, %v934_v20  ;;  %v1263_v20 = vperm.slane %v2175_v53, 3 }
 0x6ea   : > { %1089 = vmatpush.bf16.msra.mxu2 %v1080_v60  ;;  %v1915_v31 = vpop.eup %1914 }
 0x6eb   : > { %v1126_v29 = vpop.xlane.xlu0 %1125  ;;  %v1072_v33 = vmul.f32 %v1915_v31, %v2254_v50 }
 0x6ed   : > { %v1073_v34 = vpack.c.bf16 %v1072_v33, %v1072_v33 }
 0x6f3   : > { %v1182_v35 = vpop.xlane.xlu1 %1181 }
 0x6f4   : > { %1916 = vrcp.f32 %v1182_v35 }
 0x6f7   : > { %1724 = vmatmul.msk.bf16.vlgmr.msrb.gmra.mxu2 %vm765_vm7, %v935_v28 }
 0x6fa   : > { %v1917_v37 = vpop.eup %1916 }
 0x6fb   : > { %v1184_v39 = vmul.f32 %v1917_v37, %v1905_v59 }
 0x6fd   : > { %v1185_v40 = vpack.c.bf16 %v1184_v39, %v1184_v39 }
 0x6fe   : > { %v1187_v30 = vpop.permute.xlu0 %1186 }
 0x6ff   : > { %v1192_v32 = vand.u32 %v1187_v30, %v2199_v26 }
 0x701   : > { %1201 = vmatpush.bf16.msrb.mxu2 %v1192_v32 }
 0x707   : > { %1728 = vmatmul.msk.bf16.vlgmr.msra.gmra.mxu2 %vm765_vm7, %v1073_v34 }
 0x708   : > { %v897_v36 = vpop.f32.mrf.mxu1 }
 0x710   : > { %v899_v38 = vpop.f32.mrf.mxu1 }
 0x717   : > { %1732 = vmatmul.msk.bf16.vlgmr.msrb.gmra.mxu2 %vm765_vm7, %v1185_v40 }
 0x71c   : > { %v1014_v41 = vpop.xlane.xlu2 %1013 }
 0x71d   : > { %1918 = vrcp.f32 %v1014_v41 }
 0x71e   : > { %1920 = vrcp.f32 %v1126_v29 }
 0x723   : > { %v1919_v42 = vpop.eup %1918 }
 0x724   : > { %v1016_v43 = vmul.f32 %v1919_v42, %v1909_v12  ;;  %v1131_v44 = vpop.permute.xlu2 %1130  ;;  %v1921_v47 = vpop.eup %1920 }
 0x725   : > { %v1136_v45 = vand.u32 %v1131_v44, %v2199_v26  ;;  %v1128_v48 = vmul.f32 %v1921_v47, %v2258_v54  ;;  %v1819_v47 = vld [vmem:[%s2079_s28] sm:$0xff] }
 0x726   : > { %v1017_v46 = vpack.c.bf16 %v1016_v43, %v1016_v43  ;;  %v1820_v43 = vld [vmem:[%s2079_s28 + $0x8] sm:$0xff] }
 0x727   : > { %1145 = vmatpush.bf16.msrb.mxu1 %v1136_v45  ;;  %v1129_v49 = vpack.c.bf16 %v1128_v48, %v1128_v48 }
 0x728   : > { %1726 = vmatmul.msk.bf16.vlgmr.msra.gmra.mxu1 %vm765_vm7, %v1017_v46 }
 0x72b   : > { %1343 = vmatpush.bf16.msra.mxu1 %v1820_v43 }
 0x72f   : > { %1344 = vmatpush.bf16.msra.mxu1 %v1819_v47 }
 0x738   : > { %1730 = vmatmul.msk.bf16.vlgmr.msrb.gmra.mxu1 %vm765_vm7, %v1129_v49 }
 0x76a   : > { %v841_v50 = vpop.f32.mrf.mxu2 }
 0x772   : > { %v843_v51 = vpop.f32.mrf.mxu2 }
 0x77a   : > { %v953_v52 = vpop.f32.mrf.mxu2 }
 0x782   : > { %v955_v55 = vpop.f32.mrf.mxu2 }
 0x78a   : > { %v1091_v56 = vpop.f32.mrf.mxu2 }
 0x78b   : > { %v1874_v57 = vpack.i.bf16 %v841_v50, %v1091_v56 }
 0x78d   : > { %1875 = vrot.lane.b32.xlu0 %v1874_v57, %s1990_s17 }
 0x792   : > { %v1093_v26 = vpop.f32.mrf.mxu2 }
 0x79a   : > { %v1203_v58 = vpop.f32.mrf.mxu2 }
 0x79b   : > { %v1879_v59 = vpack.i.bf16 %v953_v52, %v1203_v58 }
 0x79d   : > { %1880 = vrot.lane.b32.xlu0 %v1879_v59, %s1991_s27 }
 0x7a2   : > { %v1205_v61 = vpop.f32.mrf.mxu2 }
 0x7a5   : > { %v1035_v54 = vpop.f32.mrf.mxu1 }
 0x7ad   : > { %v1037_v62 = vpop.f32.mrf.mxu1 }
 0x7b5   : > { %v1147_v63 = vpop.f32.mrf.mxu1 }
 0x7b6   : > { %v1869_v1 = vpack.i.bf16 %v897_v36, %v1147_v63 }
 0x7b8   : > { %1870 = vrot.lane.b32.xlu1 %v1869_v1, %s1992_s29  ;;  %v1310_v1 = vperm.slane %v2175_v53, 4 }
 0x7bd   : > { %v1149_v2 = vpop.f32.mrf.mxu1 }
 0x7ff   : > { %v1876_v6 = vpop.permute.xlu0 %1875 }
 0x800   : > { %v1878_v7 = vunpack.i.h.bf16 %v1876_v6  ;;  %v1877_v9 = vunpack.i.l.bf16 %v1876_v6  ;;  %v1313_v6 = vperm.slane %v2175_v53, 5 }
 0x802   : > { %v969_v14 = vsel %vm730_vm3, %v2233_v4, %v1878_v7  ;;  %v1219_v16 = vsel %vm730_vm3, %v1035_v54, %v1877_v9 }
 0x80f   : > { %v1881_v10 = vpop.permute.xlu0 %1880 }
 0x810   : > { %v1882_v17 = vunpack.i.l.bf16 %v1881_v10  ;;  %v1883_v21 = vunpack.i.h.bf16 %v1881_v10 }
 0x82a   : > { %v1871_v8 = vpop.permute.xlu1 %1870 }
 0x82b   : > { %v1873_v11 = vunpack.i.h.bf16 %v1871_v8  ;;  %v1872_v12 = vunpack.i.l.bf16 %v1871_v8 }
 0x82d   : > { %v971_v18 = vsel %vm970_vm8, %v969_v14, %v1873_v11  ;;  %v1220_v19 = vsel %vm970_vm8, %v1219_v16, %v1872_v12  ;;  %v1828_v14 = vld [vmem:[%s2084_s11 + $0x38] sm:$0xff]  ;;  %v1827_v16 = vld [vmem:[%s2084_s11 + $0x30] sm:$0xff] }
 0x82e   : > { %v1221_v22 = vsel %vm972_vm9, %v1220_v19, %v1882_v17  ;;  %v973_v60 = vsel %vm972_vm9, %v971_v18, %v1883_v21  ;;  %1458 = vmatpush.bf16.msrb.mxu3 %v1828_v14  ;;  %v1826_v17 = vld [vmem:[%s2084_s11 + $0x28] sm:$0xff]  ;;  %v1825_v18 = vld [vmem:[%s2084_s11 + $0x20] sm:$0xff]  ;;  %v1321_v19 = vperm.slane %v2175_v53, 6  ;;  %v1824_v21 = vld [vmem:[%s2084_s11 + $0x18] sm:$0xff] }
 0x82f   : > { %v1223_v24 = vrot.slane %v1221_v22, 3 }
 0x831   : > { %v1226_v25 = vsel %vm1225_vm12, %v973_v60, %v1223_v24  ;;  %v1823_v60 = vld [vmem:[%s2084_s11 + $0x10] sm:$0xff] }
 0x832   : > { %v1227_v27 = vpack.c.bf16 %v1223_v24, %v1226_v25  ;;  %1459 = vmatpush.bf16.msrb.mxu3 %v1827_v16 }
 0x834   : > { %1741 = vmatmul.msk.bf16.vlgmr.msra.gmra.mxu0 %vm629_vm10, %v1227_v27 }
 0x836   : > { %1460 = vmatpush.bf16.msrb.mxu3 %v1826_v17 }
 0x83a   : > { %1461 = vmatpush.bf16.msrb.mxu3 %v1825_v18 }
 0x83e   : > { %1462 = vmatpush.bf16.msrb.mxu3 %v1824_v21 }
 0x842   : > { %1463 = vmatpush.bf16.msrb.mxu3 %v1823_v60 }
 0x8b1   : > { %v1256_v28 = vpop.f32.mrf.mxu0 }
 0x8b2   : > { %v1261_v29 = vadd.f32 %v1256_v28, %v2154_v13 }
 0x8b4   : > { %v2294_v4 = vadd.f32 %v1263_v20, %v1261_v29 }
 0x8b6   : > { %v1266_v30 = vsel %vm629_vm10, %v2294_v4, 0.0 }
 0x8b7   : > { %1267 = vadd.xlane.f32.xlu2 %v1266_v30  ;;  %v1821_v30 = vld [vmem:[%s2084_s11] sm:$0xff] }
 0x8b9   : > { %v1258_v31 = vpop.f32.mrf.mxu0 }
 0x8ba   : > { %v1262_v32 = vadd.f32 %v1258_v31, %v2158_v15 }
 0x8bc   : > { %v2299_v33 = vadd.f32 %v1263_v20, %v1262_v32  ;;  %v1822_v20 = vld [vmem:[%s2084_s11 + $0x8] sm:$0xff] }
 0x8bd   : > { %1464 = vmatpush.bf16.msrb.mxu3 %v1822_v20 }
 0x8be   : > { %v1269_v34 = vsel %vm633_vm11, %v2299_v33, 0.0 }
 0x8bf   : > { %1270 = vadd.xlane.f32.xlu0 %v1269_v34 }
 0x8c1   : > { %1465 = vmatpush.bf16.msrb.mxu3 %v1821_v30 }
 0x92a   : > { %v1268_v35 = vpop.xlane.xlu2 %1267 }
 0x92b   : > { %v1272_v36 = vmul.f32 %v1268_v35, %v2162_v23 }
 0x92d   : > { %v1274_v13 = vsub.f32 %v2294_v4, %v1272_v36 }
 0x92f   : > { %v1276_v37 = vmul.f32 %v1274_v13, %v1274_v13 }
 0x931   : > { %v1278_v38 = vsel %vm629_vm10, %v1276_v37, 0.0 }
 0x932   : > { %1279 = vadd.xlane.f32.xlu1 %v1278_v38  ;;  %v1271_v39 = vpop.xlane.xlu0 %1270 }
 0x933   : > { %v1273_v15 = vmul.f32 %v1271_v39, %v2162_v23 }
 0x935   : > { %v1275_v40 = vsub.f32 %v2299_v33, %v1273_v15 }
 0x937   : > { %v1277_v41 = vmul.f32 %v1275_v40, %v1275_v40 }
 0x939   : > { %v1281_v42 = vsel %vm633_vm11, %v1277_v41, 0.0 }
 0x93a   : > { %1282 = vadd.xlane.f32.xlu2 %v1281_v42 }
 0x9a5   : > { %v1280_v44 = vpop.xlane.xlu1 %1279 }
 0x9a6   : > { %v1284_v45 = vmul.f32 %v1280_v44, %v2162_v23 }
 0x9a8   : > { %v1286_v46 = vadd.f32 1e-05, %v1284_v45 }
 0x9aa   : > { %1922 = vrsqrt.f32 %v1286_v46  ;;  %vm1294_vm14 = vweird.f32 %v1286_v46 }
 0x9ad   : > { %v1283_v48 = vpop.xlane.xlu2 %1282 }
 0x9ae   : > { %v1285_v49 = vmul.f32 %v1283_v48, %v2162_v23 }
 0x9b0   : > { %v1923_v50 = vpop.eup %1922  ;;  %v1287_v51 = vadd.f32 1e-05, %v1285_v49 }
 0x9b1   : > { %v1289_v52 = vmul.f32 %v1923_v50, %v1286_v46  ;;  %vm1295_vm13 = vweird.f32 %v1923_v50 }
 0x9b2   : > { %1924 = vrsqrt.f32 %v1287_v51  ;;  %vm1296_vm15 = vmor %vm1294_vm14, %vm1295_vm13  ;;  %vm1304_vm1 = vweird.f32 %v1287_v51 }
 0x9b3   : > { %v1290_v55 = vmul.f32 %v1923_v50, %v1289_v52 }
 0x9b5   : > { %v1291_v56 = vmul.f32 0.5, %v1290_v55 }
 0x9b7   : > { %v1292_v57 = vsub.f32 1.5, %v1291_v56 }
 0x9b8   : > { %v1925_v26 = vpop.eup %1924 }
 0x9b9   : > { %v1293_v58 = vmul.f32 %v1923_v50, %v1292_v57  ;;  %v1299_v59 = vmul.f32 %v1925_v26, %v1287_v51  ;;  %vm1305_vm0 = vweird.f32 %v1925_v26 }
 0x9ba   : > { %vm1306_vm2 = vmor %vm1304_vm1, %vm1305_vm0 }
 0x9bb   : > { %v1300_v61 = vmul.f32 %v1925_v26, %v1299_v59  ;;  %v1297_v54 = vsel %vm1296_vm15, %v1923_v50, %v1293_v58 }
 0x9bc   : > { %v1308_v2 = vmul.f32 %v1297_v54, %v1274_v13 }
 0x9bd   : > { %v1301_v62 = vmul.f32 0.5, %v1300_v61  ;;  %v1474_v61 = vperm.slane %v2175_v53, 7 }
 0x9be   : > { %v1311_v7 = vmul.f32 %v1310_v1, %v1308_v2 }
 0x9bf   : > { %v1302_v63 = vsub.f32 1.5, %v1301_v62 }
 0x9c0   : > { %v1314_v8 = vadd.f32 %v1313_v6, %v1311_v7 }
 0x9c1   : > { %v1303_v3 = vmul.f32 %v1925_v26, %v1302_v63 }
 0x9c3   : > { %v1307_v5 = vsel %vm1306_vm2, %v1925_v26, %v1303_v3 }
 0x9c4   : > { %v1309_v9 = vmul.f32 %v1307_v5, %v1275_v40 }
 0x9c6   : > { %v1312_v10 = vmul.f32 %v1310_v1, %v1309_v9 }
 0x9c8   : > { %v1315_v11 = vadd.f32 %v1313_v6, %v1312_v10 }
 0x9ca   : > { %v1316_v12 = vpack.c.bf16 %v1315_v11, %v1314_v8 }
 0x9cc   : > { %1750 = vmatmul.msk.bf16.vlgmr.msra.gmra.mxu1 %vm629_vm10, %v1316_v12 }
 0xa49   : > { %v1346_v22 = vpop.f32.mrf.mxu1 }
 0xa4a   : > { %v1347_v24 = vadd.f32 %v1346_v22, %v1321_v19 }
 0xa4c   : > { %v1751_v25 = vmul.f32 -1.702, %v1347_v24 }
 0xa4e   : > { %v1355_v27 = vmul.f32 1.442695, %v1751_v25 }
 0xa50   : > { %1926 = vpow2.f32 %v1355_v27 }
 0xa51   : > { %v1348_v28 = vpop.f32.mrf.mxu1 }
 0xa52   : > { %v1349_v29 = vadd.f32 %v1348_v28, %v1321_v19 }
 0xa54   : > { %v1752_v31 = vmul.f32 -1.702, %v1349_v29 }
 0xa56   : > { %v1927_v32 = vpop.eup %1926  ;;  %v1357_v34 = vmul.f32 1.442695, %v1752_v31 }
 0xa57   : > { %v1359_v35 = vadd.f32 1.0, %v1927_v32 }
 0xa58   : > { %1928 = vpow2.f32 %v1357_v34 }
 0xa59   : > { %1930 = vrcp.f32 %v1359_v35  ;;  %v1372_v43 = vand.u32 2147483648, %v1359_v35  ;;  %vm1366_vm4 = vweird.f32 %v1359_v35  ;;  %v1370_v44 = vand.u32 2147483647, %v1359_v35 }
 0xa5b   : > { %v1373_v50 = vor.u32 1.1754944e-38, %v1372_v43  ;;  %vm1371_vm7 = vcmp.eq.f32.partialorder %v1370_v44, 8.507059e+37 }
 0xa5e   : > { %v1929_v36 = vpop.eup %1928 }
 0xa5f   : > { %v1931_v13 = vpop.eup %1930  ;;  %v1360_v37 = vadd.f32 1.0, %v1929_v36 }
 0xa60   : > { %v1362_v38 = vmul.f32 %v1931_v13, %v1359_v35  ;;  %vm1367_vm3 = vweird.f32 %v1931_v13 }
 0xa61   : > { %1932 = vrcp.f32 %v1360_v37  ;;  %vm1368_vm5 = vmor %vm1366_vm4, %vm1367_vm3  ;;  %v1387_v46 = vand.u32 2147483648, %v1360_v37  ;;  %v1385_v49 = vand.u32 2147483647, %v1360_v37  ;;  %vm1381_vm8 = vweird.f32 %v1360_v37 }
 0xa62   : > { %v1363_v39 = vsub.f32 1.0, %v1362_v38 }
 0xa63   : > { %v1388_v55 = vor.u32 1.1754944e-38, %v1387_v46  ;;  %vm1386_vm12 = vcmp.eq.f32.partialorder %v1385_v49, 8.507059e+37 }
 0xa64   : > { %v1364_v15 = vmul.f32 %v1931_v13, %v1363_v39 }
 0xa66   : > { %v1365_v41 = vadd.f32 %v1931_v13, %v1364_v15 }
 0xa67   : > { %v1933_v40 = vpop.eup %1932 }
 0xa68   : > { %v1377_v42 = vmul.f32 %v1933_v40, %v1360_v37  ;;  %v1369_v47 = vsel %vm1368_vm5, %v1931_v13, %v1365_v41  ;;  %vm1382_vm6 = vweird.f32 %v1933_v40 }
 0xa69   : > { %v1374_v52 = vsel %vm1371_vm7, %v1373_v50, %v1369_v47  ;;  %vm1383_vm9 = vmor %vm1381_vm8, %vm1382_vm6 }
 0xa6a   : > { %v1378_v45 = vsub.f32 1.0, %v1377_v42  ;;  %v1391_v26 = vmul.f32 %v1374_v52, %v1347_v24 }
 0xa6c   : > { %v1379_v48 = vmul.f32 %v1933_v40, %v1378_v45 }
 0xa6e   : > { %v1380_v51 = vadd.f32 %v1933_v40, %v1379_v48 }
 0xa70   : > { %v1384_v56 = vsel %vm1383_vm9, %v1933_v40, %v1380_v51 }
 0xa71   : > { %v1389_v57 = vsel %vm1386_vm12, %v1388_v55, %v1384_v56 }
 0xa72   : > { %v1392_v58 = vmul.f32 %v1389_v57, %v1349_v29 }
 0xa74   : > { %v1393_v59 = vpack.c.bf16 %v1392_v58, %v1391_v26 }
 0xa76   : > { %1466 = vmatmul.bf16.vlgmr.msrb.gmra.mxu3 %v1393_v59 }
 0xaf9   : > { %v1467_v54 = vpop.f32.mrf.mxu3 }
 0xafa   : > { %v1472_v62 = vadd.f32 %v1467_v54, %v2294_v4 }
 0xafc   : > { %v1475_v63 = vadd.f32 %v1474_v61, %v1472_v62 }
 0xafe   : > { %1477 = vst.msk [vmem:[#allocation2] sm:$0xff] %vm629_vm10, %v1475_v63 }
 0xb01   : > { %v1469_v1 = vpop.f32.mrf.mxu3 }
 0xb02   : > { %v1473_v2 = vadd.f32 %v1469_v1, %v2299_v33  ;;  %1482 = sbr.rel (%p1785_p5) target bundleno = 3230 (0xc9e), region = 68 }
 0xb04   : > { %v1476_v3 = vadd.f32 %v1474_v61, %v1473_v2 }
 0xb06   : > { %1478 = vst.msk [vmem:[#allocation2 + $0x8] sm:$0x3] %vm633_vm11, %v1476_v3 }
 0xb07   : > { %v1484_v5 = vrot.slane %v1475_v63, 4  ;;  %vm1486_vm13 = vcmask 1040384   ;;  %v1830_v33 = vld [vmem:[%s2355_s4 + $0x8] sm:$0xff]  ;;  %v1829_v11 = vld [vmem:[%s2355_s4] sm:$0xff]  ;;  %v1510_v60 = vperm.slane %v2063_v0, 2  ;;  %v1512_v20 = vperm.slane %v2063_v0, 3 }
 0xb08   : > { %1540 = vmatpush.bf16.msra.mxu0 %v1830_v33  ;;  %vm1547_vm0 = vcmask 123904  }
 0xb09   : > { %v1487_v6 = vsel %vm1486_vm13, %v1475_v63, %v1484_v5 }
 0xb0a   : > { %v1488_v53 = vsel %vm633_vm11, %v1487_v6, 0.0 }
 0xb0b   : > { %1489 = vadd.xlane.f32.xlu0 %v1488_v53 }
 0xb0c   : > { %1541 = vmatpush.bf16.msra.mxu0 %v1829_v11 }
 0xb7e   : > { %v1490_v7 = vpop.xlane.xlu0 %1489 }
 0xb7f   : > { %v1491_v4 = vmul.f32 %v1490_v7, %v2162_v23 }
 0xb81   : > { %v1492_v9 = vsub.f32 %v1487_v6, %v1491_v4 }
 0xb83   : > { %v1493_v10 = vmul.f32 %v1492_v9, %v1492_v9 }
 0xb85   : > { %v1494_v8 = vsel %vm633_vm11, %v1493_v10, 0.0 }
 0xb86   : > { %1495 = vadd.xlane.f32.xlu0 %v1494_v8 }
 0xbf9   : > { %v1496_v12 = vpop.xlane.xlu0 %1495 }
 0xbfa   : > { %v1497_v14 = vmul.f32 %v1496_v12, %v2162_v23 }
 0xbfc   : > { %v1498_v16 = vadd.f32 1e-05, %v1497_v14 }
 0xbfe   : > { %1934 = vrsqrt.f32 %v1498_v16  ;;  %vm1505_vm14 = vweird.f32 %v1498_v16 }
 0xc04   : > { %v1935_v17 = vpop.eup %1934 }
 0xc05   : > { %v1500_v18 = vmul.f32 %v1935_v17, %v1498_v16  ;;  %vm1506_vm11 = vweird.f32 %v1935_v17 }
 0xc06   : > { %vm1507_vm15 = vmor %vm1505_vm14, %vm1506_vm11 }
 0xc07   : > { %v1501_v19 = vmul.f32 %v1935_v17, %v1500_v18 }
 0xc09   : > { %v1502_v21 = vmul.f32 0.5, %v1501_v19 }
 0xc0b   : > { %v1503_v22 = vsub.f32 1.5, %v1502_v21 }
 0xc0d   : > { %v1504_v24 = vmul.f32 %v1935_v17, %v1503_v22 }
 0xc0f   : > { %v1508_v25 = vsel %vm1507_vm15, %v1935_v17, %v1504_v24 }
 0xc10   : > { %v1509_v27 = vmul.f32 %v1508_v25, %v1492_v9 }
 0xc12   : > { %v1511_v28 = vmul.f32 %v1510_v60, %v1509_v27 }
 0xc14   : > { %v1513_v29 = vadd.f32 %v1512_v20, %v1511_v28 }
 0xc16   : > { %v1514_v23 = vpack.c.bf16 %v1513_v29, %v1513_v29 }
 0xc18   : > { %1794 = vmatmul.msk.bf16.vlgmr.msra.gmra.mxu0 %vm629_vm10, %v1514_v23 }
 0xc95   : > { %v1543_v30 = vpop.f32.mrf.mxu0 }
 0xc96   : > { %1548 = vst.msk [vmem:[#allocation3] sm:$0x3] %vm1547_vm0, %v1543_v30 }
 0xc9d   : > { %v1545_v31 = vpop.f32.mrf.mxu0 }
 0xc9e PF: > { %p1835_p6 = scmp.eq.s32.totalorder %s2055_s14, 1  ;;  %s1993_s22 = smov [#allocation3]  }
 0xc9f   : > { %s1555_s20 = sshll.u32 %s1993_s22, 4  ;;  %s1557_s16 = sshll.u32 %s2361_s10, 4  ;;  %s1556_s20 = int_to_ptr.vmem [resolvable:$true] %s1555_s20  ;;  %s1558_s16 = int_to_ptr.hbm [resolvable:$true] %s1557_s16 }
 0xca0   : > { %1832 = dma.vmem_to_hbm [thread:$0]  (%p1835_p6), %s1556_s20, 32, %s1558_s16, [#allocation4]  }
 0xca1   : > { %1969 = dma.done.wait (%p1835_p6), [#allocation4], 32  }
 0xca2   : > { %1971 = vsyncadd (%p1835_p6), [#allocation4], 4294967264 }
 0xca3 PF: > { %s21_s13 = sadd.s32 1, %s1974_s13  }
 0xca4   : > { %p18_p7 = scmp.ge.s32.totalorder %s21_s13, 4  }
 0xca6   :  { %20 = sbr.rel (!%p18_p7) target bundleno = 1 (0x1), region = 107 }
 0xcab   :  { %1571 = vsyncpa [#allocation4], 1 }
 0xcac   :  { %1573 = vsyncpa [#allocation4 + $0x1], 1 }

</bundles_post_ra>
